<compile_context>
chip_gen: v6e
topology: v6e:2x2x1
jax: 0.10.0
libtpu: 0.0.40
codegen_flags: <defaults>
</compile_context>

<pallas_src>
import math

import jax
import jax.numpy as jnp
from jax.experimental import pallas as pl
from jax.experimental.pallas import tpu as pltpu


def _round_up(a: int, b: int) -> int:
    return (a + b - 1) // b * b


def _ffn_kernel(x_ref, w1_ref, b1_ref, w2_ref, b2_ref, o_ref):
    # x_ref:  (TM, d_model)     compute dtype (bf16 by default)
    # w1_ref: (d_model, d_ff)   compute dtype
    # b1_ref: (1, d_ff)         f32
    # w2_ref: (d_ff, d_model)   compute dtype
    # b2_ref: (1, d_model)      f32
    # o_ref:  (TM, d_model)     original activation dtype
    x = x_ref[...]
    # First matmul on the MXU with f32 accumulation; bias fused on the f32
    # accumulator before the activation.
    h = jnp.dot(x, w1_ref[...], preferred_element_type=jnp.float32) + b1_ref[...]
    # SiLU in f32: the logistic lowers to the EUP slot, only the multiply
    # lands on the VPU; computed once on the accumulator (no extra temps).
    h = h * jax.nn.sigmoid(h)
    # Second matmul: cast the activation to the compute dtype for the MXU.
    o = jnp.dot(h.astype(w2_ref.dtype), w2_ref[...],
                preferred_element_type=jnp.float32) + b2_ref[...]
    o_ref[...] = o.astype(o_ref.dtype)


def _build_ffn_call(n_pad, d_model, d_ff, tm, out_dtype, compute_dtype,
                    single_buffer_weights):
    cbytes = jnp.dtype(compute_dtype).itemsize
    obytes = jnp.dtype(out_dtype).itemsize

    # Explicit VMEM budget: resident weights (+biases), double-buffered
    # activation tiles, the f32 (tm, d_ff) intermediate, plus compiler
    # headroom.  Capped at 64 MiB so the budget is valid per-TensorCore on
    # v7x; v5e/v6e (128 MiB) fit trivially.
    w_bufs = 1 if single_buffer_weights else 2
    weight_bytes = 2 * d_model * d_ff * cbytes
    bias_bytes = (d_ff + d_model) * 4
    x_tile = tm * d_model * cbytes
    o_tile = tm * d_model * obytes
    h_tile = tm * d_ff * 4
    needed = (w_bufs * (weight_bytes + bias_bytes)
              + 2 * (x_tile + o_tile) + 2 * h_tile)
    vmem_limit = int(min(max(needed + (8 << 20), 16 << 20), 64 << 20))
    # TODO(synk): for very large FFNs (e.g. d_model=1024, d_ff=4096) on v7x,
    # add a second grid axis over d_ff chunks with an f32 accumulator scratch
    # instead of keeping both full weights resident.

    if single_buffer_weights:
        # Constant-index weight/bias blocks never change across the grid:
        # single-buffer them to halve their resident VMEM footprint.
        w_kwargs = dict(pipeline_mode=pl.Buffered(1))
    else:
        w_kwargs = {}

    return pl.pallas_call(
        _ffn_kernel,
        out_shape=jax.ShapeDtypeStruct((n_pad, d_model), out_dtype),
        grid_spec=pltpu.PrefetchScalarGridSpec(
            num_scalar_prefetch=0,
            grid=(n_pad // tm,),
            in_specs=[
                pl.BlockSpec((tm, d_model), lambda i: (i, 0)),                 # x tile
                pl.BlockSpec((d_model, d_ff), lambda i: (0, 0), **w_kwargs),   # W1
                pl.BlockSpec((1, d_ff), lambda i: (0, 0), **w_kwargs),         # b1
                pl.BlockSpec((d_ff, d_model), lambda i: (0, 0), **w_kwargs),   # W2
                pl.BlockSpec((1, d_model), lambda i: (0, 0), **w_kwargs),      # b2
            ],
            out_specs=pl.BlockSpec((tm, d_model), lambda i: (i, 0)),
        ),
        compiler_params=pltpu.CompilerParams(
            dimension_semantics=("parallel",),
            vmem_limit_bytes=vmem_limit,
        ),
    )


def conformer_feed_forward(x, w1, b1, w2, b2, *, tm=256,
                           compute_dtype=jnp.bfloat16):
    """x: (B, T, d_model) -> (B, T, d_model).

    Matches nn.Linear(d_model, d_ff) -> SiLU -> nn.Linear(d_ff, d_model),
    weights kept in (in, out) layout.  Operands are cast to `compute_dtype`
    (bf16 by default) for the MXU; accumulation, bias and SiLU stay in f32.
    """
    B, T, d_model = x.shape
    d_ff = w1.shape[1]
    N = B * T

    # Minimum sublane tile for the compute dtype (f32: 8 rows, bf16: 16 rows).
    min_rows = 16 if jnp.dtype(compute_dtype).itemsize == 2 else 8
    # Row tile: default 256 keeps full-height MXU tiles on v5e (128x128) and
    # v6e/v7x (256x256); never larger than the 128-aligned row count, always
    # a multiple of the sublane minimum.
    tm_eff = max(min_rows, min(tm, _round_up(N, 128)))
    tm_eff = _round_up(tm_eff, min_rows)
    n_pad = _round_up(N, tm_eff)

    x2d = x.reshape(N, d_model).astype(compute_dtype)
    if n_pad != N:
        # Pad rows instead of asserting divisibility; padded rows are sliced
        # off after the kernel.
        x2d = jnp.pad(x2d, ((0, n_pad - N), (0, 0)))

    w1c = w1.astype(compute_dtype)
    w2c = w2.astype(compute_dtype)
    b1_2d = b1.reshape(1, d_ff).astype(jnp.float32)
    b2_2d = b2.reshape(1, d_model).astype(jnp.float32)

    # Prefer single-buffered weight blocks; fall back to the default
    # double-buffered pipeline if this JAX build rejects pl.Buffered(1).
    out2d = None
    for single_buffer in (True, False):
        try:
            call = _build_ffn_call(n_pad, d_model, d_ff, tm_eff, x.dtype,
                                   compute_dtype, single_buffer)
            out2d = call(x2d, w1c, b1_2d, w2c, b2_2d)
            break
        except Exception:
            if not single_buffer:
                raise
    return out2d[:N].reshape(B, T, d_model)


def init_params(key, d_model, d_ff, dtype=jnp.float32):
    """Deterministic init mimicking PyTorch nn.Linear defaults.

    PyTorch stores Linear weight as (out, in); we keep (in, out) for the
    kernel, so values are generated in (out, in) and transposed.
    """
    k1, k2, k3, k4 = jax.random.split(key, 4)
    bound1 = 1.0 / math.sqrt(d_model)
    bound2 = 1.0 / math.sqrt(d_ff)
    w1 = jax.random.uniform(k1, (d_ff, d_model), dtype, -bound1, bound1).T
    b1 = jax.random.uniform(k2, (d_ff,), dtype, -bound1, bound1)
    w2 = jax.random.uniform(k3, (d_model, d_ff), dtype, -bound2, bound2).T
    b2 = jax.random.uniform(k4, (d_model,), dtype, -bound2, bound2)
    return w1, b1, w2, b2


def _reference_f32(x, w1, b1, w2, b2):
    h = jnp.dot(x, w1) + b1
    h = h * jax.nn.sigmoid(h)
    return jnp.dot(h, w2) + b2


def _reference_mixed(x, w1, b1, w2, b2, compute_dtype):
    xc = x.astype(compute_dtype)
    h = jnp.dot(xc, w1.astype(compute_dtype),
                preferred_element_type=jnp.float32) + b1
    h = h * jax.nn.sigmoid(h)
    o = jnp.dot(h.astype(compute_dtype), w2.astype(compute_dtype),
                preferred_element_type=jnp.float32) + b2
    return o.astype(x.dtype)


if __name__ == "__main__":
    # Small shapes consistent with the module's forward: (B, T, d_model).
    B, T, d_model, d_ff = 2, 8, 128, 512

    key = jax.random.PRNGKey(0)
    kx, kp = jax.random.split(key)
    x = jax.random.normal(kx, (B, T, d_model), jnp.float32)
    w1, b1, w2, b2 = init_params(kp, d_model, d_ff)

    out = conformer_feed_forward(x, w1, b1, w2, b2)
    out = jax.block_until_ready(out)
    assert out.shape == (B, T, d_model)

    # Tight check against a reference using the same bf16-operand / f32-accum
    # recipe, and a looser semantic check against the pure-f32 module math.
    ref_mixed = _reference_mixed(x, w1, b1, w2, b2, jnp.bfloat16)
    assert jnp.allclose(out, ref_mixed, atol=1e-2, rtol=1e-2), \
        "mismatch vs mixed-precision reference"
    ref_f32 = _reference_f32(x, w1, b1, w2, b2)
    assert jnp.allclose(out, ref_f32, atol=5e-2, rtol=5e-2), \
        "mismatch vs f32 reference"

    print("KERNEL_OK")
</pallas_src>

<mosaic_0001>
module attributes {stable_mosaic.version = 11 : i64} {
  func.func @_ffn_kernel(%arg0: i32, %arg1: memref<128x128xbf16, #tpu.memory_space<vmem>>, %arg2: memref<128x512xbf16, #tpu.memory_space<vmem>>, %arg3: memref<1x512xf32, #tpu.memory_space<vmem>>, %arg4: memref<512x128xbf16, #tpu.memory_space<vmem>>, %arg5: memref<1x128xf32, #tpu.memory_space<vmem>>, %arg6: memref<128x128xf32, #tpu.memory_space<vmem>>) attributes {dimension_semantics = [#tpu.dimension_semantics<parallel>], iteration_bounds = array<i64: 1>, scalar_prefetch = 0 : i64, scratch_operands = 0 : i64, tpu.core_type = #tpu.core_type<tc>, window_params = [{transform_indices = @transform_0, window_bounds = array<i64: 128, 128>}, {pipeline_mode = #tpu.pipeline_mode<synchronous>, transform_indices = @transform_1, window_bounds = array<i64: 128, 512>}, {pipeline_mode = #tpu.pipeline_mode<synchronous>, transform_indices = @transform_2, window_bounds = array<i64: 1, 512>}, {pipeline_mode = #tpu.pipeline_mode<synchronous>, transform_indices = @transform_3, window_bounds = array<i64: 512, 128>}, {pipeline_mode = #tpu.pipeline_mode<synchronous>, transform_indices = @transform_4, window_bounds = array<i64: 1, 128>}, {transform_indices = @transform_5, window_bounds = array<i64: 128, 128>}]} {
    %c0 = arith.constant 0 : index
    %c0_0 = arith.constant 0 : index
    %0 = vector.load %arg1[%c0, %c0_0] : memref<128x128xbf16, #tpu.memory_space<vmem>>, vector<128x128xbf16>
    %c0_1 = arith.constant 0 : index
    %c0_2 = arith.constant 0 : index
    %1 = vector.load %arg2[%c0_1, %c0_2] : memref<128x512xbf16, #tpu.memory_space<vmem>>, vector<128x512xbf16>
    %cst = arith.constant dense<0.000000e+00> : vector<128x512xf32>
    %2 = tpu.matmul %0, %1, %cst {dimension_numbers = #tpu.dot_dimension_numbers<[1], [0], [0], [1], [0, 0, 1, 1], [], []>} : vector<128x128xbf16>, vector<128x512xbf16>, vector<128x512xf32> -> vector<128x512xf32>
    %c0_3 = arith.constant 0 : index
    %c0_4 = arith.constant 0 : index
    %3 = vector.load %arg3[%c0_3, %c0_4] : memref<1x512xf32, #tpu.memory_space<vmem>>, vector<1x512xf32>
    %4 = vector.broadcast %3 : vector<1x512xf32> to vector<128x512xf32>
    %5 = arith.addf %2, %4 : vector<128x512xf32>
    %6 = arith.negf %5 : vector<128x512xf32>
    %7 = math.exp %6 : vector<128x512xf32>
    %cst_5 = arith.constant 1.000000e+00 : f32
    %8 = vector.broadcast %cst_5 : f32 to vector<128x512xf32>
    %9 = arith.addf %8, %7 : vector<128x512xf32>
    %10 = arith.divf %8, %9 : vector<128x512xf32>
    %11 = arith.mulf %5, %10 : vector<128x512xf32>
    %12 = arith.truncf %11 : vector<128x512xf32> to vector<128x512xbf16>
    %c0_6 = arith.constant 0 : index
    %c0_7 = arith.constant 0 : index
    %13 = vector.load %arg4[%c0_6, %c0_7] : memref<512x128xbf16, #tpu.memory_space<vmem>>, vector<512x128xbf16>
    %cst_8 = arith.constant dense<0.000000e+00> : vector<128x128xf32>
    %14 = tpu.matmul %12, %13, %cst_8 {dimension_numbers = #tpu.dot_dimension_numbers<[1], [0], [0], [1], [0, 0, 1, 1], [], []>} : vector<128x512xbf16>, vector<512x128xbf16>, vector<128x128xf32> -> vector<128x128xf32>
    %c0_9 = arith.constant 0 : index
    %c0_10 = arith.constant 0 : index
    %15 = vector.load %arg5[%c0_9, %c0_10] : memref<1x128xf32, #tpu.memory_space<vmem>>, vector<1x128xf32>
    %16 = vector.broadcast %15 : vector<1x128xf32> to vector<128x128xf32>
    %17 = arith.addf %14, %16 : vector<128x128xf32>
    %c0_11 = arith.constant 0 : index
    %c0_12 = arith.constant 0 : index
    %18 = vector.load %arg6[%c0_11, %c0_12] : memref<128x128xf32, #tpu.memory_space<vmem>>, vector<128x128xf32>
    tpu.vector_store %arg6[%c0_11, %c0_12], %17 {strides = array<i32>} : memref<128x128xf32, #tpu.memory_space<vmem>>, vector<128x128xf32>,
    return
  }
  func.func @transform_0(%arg0: i32) -> (i32, i32) {
    %c0_i32 = arith.constant 0 : i32
    %c0_i32_0 = arith.constant 0 : i32
    return %arg0, %c0_i32 : i32, i32
  }
  func.func @transform_1(%arg0: i32) -> (i32, i32) {
    %c0_i32 = arith.constant 0 : i32
    %c0_i32_0 = arith.constant 0 : i32
    %c0_i32_1 = arith.constant 0 : i32
    return %c0_i32, %c0_i32_0 : i32, i32
  }
  func.func @transform_2(%arg0: i32) -> (i32, i32) {
    %c0_i32 = arith.constant 0 : i32
    %c0_i32_0 = arith.constant 0 : i32
    %c0_i32_1 = arith.constant 0 : i32
    return %c0_i32, %c0_i32_0 : i32, i32
  }
  func.func @transform_3(%arg0: i32) -> (i32, i32) {
    %c0_i32 = arith.constant 0 : i32
    %c0_i32_0 = arith.constant 0 : i32
    %c0_i32_1 = arith.constant 0 : i32
    return %c0_i32, %c0_i32_0 : i32, i32
  }
  func.func @transform_4(%arg0: i32) -> (i32, i32) {
    %c0_i32 = arith.constant 0 : i32
    %c0_i32_0 = arith.constant 0 : i32
    %c0_i32_1 = arith.constant 0 : i32
    return %c0_i32, %c0_i32_0 : i32, i32
  }
  func.func @transform_5(%arg0: i32) -> (i32, i32) {
    %c0_i32 = arith.constant 0 : i32
    %c0_i32_0 = arith.constant 0 : i32
    return %arg0, %c0_i32 : i32, i32
  }
}

module attributes {stable_mosaic.version = 11 : i64} {
  func.func @_ffn_kernel(%arg0: i32, %arg1: memref<128x128xbf16, #tpu.memory_space<vmem>>, %arg2: memref<128x512xbf16, #tpu.memory_space<vmem>>, %arg3: memref<1x512xf32, #tpu.memory_space<vmem>>, %arg4: memref<512x128xbf16, #tpu.memory_space<vmem>>, %arg5: memref<1x128xf32, #tpu.memory_space<vmem>>, %arg6: memref<128x128xf32, #tpu.memory_space<vmem>>) attributes {dimension_semantics = [#tpu.dimension_semantics<parallel>], iteration_bounds = array<i64: 1>, scalar_prefetch = 0 : i64, scratch_operands = 0 : i64, tpu.core_type = #tpu.core_type<tc>, window_params = [{transform_indices = @transform_0, window_bounds = array<i64: 128, 128>}, {pipeline_mode = #tpu.pipeline_mode<synchronous>, transform_indices = @transform_1, window_bounds = array<i64: 128, 512>}, {pipeline_mode = #tpu.pipeline_mode<synchronous>, transform_indices = @transform_2, window_bounds = array<i64: 1, 512>}, {pipeline_mode = #tpu.pipeline_mode<synchronous>, transform_indices = @transform_3, window_bounds = array<i64: 512, 128>}, {pipeline_mode = #tpu.pipeline_mode<synchronous>, transform_indices = @transform_4, window_bounds = array<i64: 1, 128>}, {transform_indices = @transform_5, window_bounds = array<i64: 128, 128>}]} {
    %c0 = arith.constant 0 : index
    %c0_0 = arith.constant 0 : index
    %0 = vector.load %arg1[%c0, %c0_0] : memref<128x128xbf16, #tpu.memory_space<vmem>>, vector<128x128xbf16>
    %c0_1 = arith.constant 0 : index
    %c0_2 = arith.constant 0 : index
    %1 = vector.load %arg2[%c0_1, %c0_2] : memref<128x512xbf16, #tpu.memory_space<vmem>>, vector<128x512xbf16>
    %cst = arith.constant dense<0.000000e+00> : vector<128x512xf32>
    %2 = tpu.matmul %0, %1, %cst {dimension_numbers = #tpu.dot_dimension_numbers<[1], [0], [0], [1], [0, 0, 1, 1], [], []>} : vector<128x128xbf16>, vector<128x512xbf16>, vector<128x512xf32> -> vector<128x512xf32>
    %c0_3 = arith.constant 0 : index
    %c0_4 = arith.constant 0 : index
    %3 = vector.load %arg3[%c0_3, %c0_4] : memref<1x512xf32, #tpu.memory_space<vmem>>, vector<1x512xf32>
    %4 = vector.broadcast %3 : vector<1x512xf32> to vector<128x512xf32>
    %5 = arith.addf %2, %4 : vector<128x512xf32>
    %6 = arith.negf %5 : vector<128x512xf32>
    %7 = math.exp %6 : vector<128x512xf32>
    %cst_5 = arith.constant 1.000000e+00 : f32
    %8 = vector.broadcast %cst_5 : f32 to vector<128x512xf32>
    %9 = arith.addf %8, %7 : vector<128x512xf32>
    %10 = arith.divf %8, %9 : vector<128x512xf32>
    %11 = arith.mulf %5, %10 : vector<128x512xf32>
    %12 = arith.truncf %11 : vector<128x512xf32> to vector<128x512xbf16>
    %c0_6 = arith.constant 0 : index
    %c0_7 = arith.constant 0 : index
    %13 = vector.load %arg4[%c0_6, %c0_7] : memref<512x128xbf16, #tpu.memory_space<vmem>>, vector<512x128xbf16>
    %cst_8 = arith.constant dense<0.000000e+00> : vector<128x128xf32>
    %14 = tpu.matmul %12, %13, %cst_8 {dimension_numbers = #tpu.dot_dimension_numbers<[1], [0], [0], [1], [0, 0, 1, 1], [], []>} : vector<128x512xbf16>, vector<512x128xbf16>, vector<128x128xf32> -> vector<128x128xf32>
    %c0_9 = arith.constant 0 : index
    %c0_10 = arith.constant 0 : index
    %15 = vector.load %arg5[%c0_9, %c0_10] : memref<1x128xf32, #tpu.memory_space<vmem>>, vector<1x128xf32>
    %16 = vector.broadcast %15 : vector<1x128xf32> to vector<128x128xf32>
    %17 = arith.addf %14, %16 : vector<128x128xf32>
    %c0_11 = arith.constant 0 : index
    %c0_12 = arith.constant 0 : index
    %18 = vector.load %arg6[%c0_11, %c0_12] : memref<128x128xf32, #tpu.memory_space<vmem>>, vector<128x128xf32>
    tpu.vector_store %arg6[%c0_11, %c0_12], %17 {strides = array<i32>} : memref<128x128xf32, #tpu.memory_space<vmem>>, vector<128x128xf32>,
    return
  }
  func.func @transform_0(%arg0: i32) -> (i32, i32) {
    %c0_i32 = arith.constant 0 : i32
    %c0_i32_0 = arith.constant 0 : i32
    return %arg0, %c0_i32 : i32, i32
  }
  func.func @transform_1(%arg0: i32) -> (i32, i32) {
    %c0_i32 = arith.constant 0 : i32
    %c0_i32_0 = arith.constant 0 : i32
    %c0_i32_1 = arith.constant 0 : i32
    return %c0_i32, %c0_i32_0 : i32, i32
  }
  func.func @transform_2(%arg0: i32) -> (i32, i32) {
    %c0_i32 = arith.constant 0 : i32
    %c0_i32_0 = arith.constant 0 : i32
    %c0_i32_1 = arith.constant 0 : i32
    return %c0_i32, %c0_i32_0 : i32, i32
  }
  func.func @transform_3(%arg0: i32) -> (i32, i32) {
    %c0_i32 = arith.constant 0 : i32
    %c0_i32_0 = arith.constant 0 : i32
    %c0_i32_1 = arith.constant 0 : i32
    return %c0_i32, %c0_i32_0 : i32, i32
  }
  func.func @transform_4(%arg0: i32) -> (i32, i32) {
    %c0_i32 = arith.constant 0 : i32
    %c0_i32_0 = arith.constant 0 : i32
    %c0_i32_1 = arith.constant 0 : i32
    return %c0_i32, %c0_i32_0 : i32, i32
  }
  func.func @transform_5(%arg0: i32) -> (i32, i32) {
    %c0_i32 = arith.constant 0 : i32
    %c0_i32_0 = arith.constant 0 : i32
    return %arg0, %c0_i32 : i32, i32
  }
}

</mosaic_0001>

<bundles_post_ra>
// kernel: tpu_custom_call.1
= control target key start
LH: loop header
LB: loop body
LE: loop exit
PB: predicated region body
PF: predicated region fallthrough
CT: control target
= control target key end

     0   :  { %10 = vsyncpa [#allocation3], 0  ;;  %s2732_s0 = inlined_call_operand.hbm [shape: bf16[128,128], index: 0, kind: input, shape index: {}]   ;;  %s2733_s1 = inlined_call_operand.hbm [shape: bf16[128,512], index: 1, kind: input, shape index: {}]   ;;  %s2734_s2 = inlined_call_operand.hbm [shape: f32[1,512], index: 2, kind: input, shape index: {}]   ;;  %s2735_s3 = inlined_call_operand.hbm [shape: bf16[512,128], index: 3, kind: input, shape index: {}]   ;;  %s2736_s4 = inlined_call_operand.vmem [shape: f32[1,128], index: 4, kind: input, shape index: {}]   ;;  %s2737_s5 = inlined_call_operand.hbm [shape: f32[128,128], index: 5, kind: output, shape index: {}]  }
   0x1   :  { %11 = vsyncpa [#allocation6], 0 }
   0x2   :  { %12 = vsyncpa [#allocation9], 0 }
   0x3   :  { %13 = vsyncpa [#allocation4], 0  ;;  %s2280_s18 = smov [#allocation5]  }
   0x4   :  { %s31_s19 = sshll.u32 %s2280_s18, 4  ;;  %s32_s19 = int_to_ptr.vmem [resolvable:$true] %s31_s19 }
   0x5   :  { %s2180_s20 = scalar_lea.vmem %s32_s19, 4096  ;;  %p2185_p1 = scmp.lt.s32.totalorder %s32_s19, %s32_s19 }
   0x6   :  { %p2181_p0 = scmp.ne.s32.totalorder %s32_s19, %s2180_s20  ;;  %p2186_p2 = scmp.lt.s32.totalorder %s2180_s20, %s2180_s20 }
   0x8   :  { %p2187_p3 = por %p2186_p2, %p2185_p1 }
   0xa   :  { %p2188_p4 = pnand %p2187_p3, %p2181_p0 }
   0xc   :  { %2191 = shalt.err (!%p2188_p4)
}
   0xd   :  { %s2281_s21 = smov 256   ;;  %s2282_s22 = smov 16  }
   0xe   :  { %37 = dma.hbm_to_vmem [thread:$0]  %s2733_s1, 4096, %s32_s19, [#allocation6], %s2281_s21, %s2281_s21, %s2282_s22  }
   0xf   :  { %s2283_s25 = smov [#allocation2]  }
  0x10   :  { %s19_s26 = sshll.u32 %s2283_s25, 4  ;;  %s20_s26 = int_to_ptr.vmem [resolvable:$true] %s19_s26 }
  0x11   :  { %s2200_s27 = scalar_lea.vmem %s20_s26, 1024  ;;  %p2205_p6 = scmp.lt.s32.totalorder %s20_s26, %s20_s26 }
  0x12   :  { %p2201_p5 = scmp.ne.s32.totalorder %s20_s26, %s2200_s27  ;;  %p2206_p7 = scmp.lt.s32.totalorder %s2200_s27, %s2200_s27 }
  0x14   :  { %p2207_p8 = por %p2206_p7, %p2205_p6 }
  0x16   :  { %p2208_p9 = pnand %p2207_p8, %p2201_p5 }
  0x18   :  { %2211 = shalt.err (!%p2208_p9)
}
  0x19   :  { %s2284_s28 = smov 64   ;;  %s2285_s29 = smov 4  }
  0x1a   :  { %25 = dma.hbm_to_vmem [thread:$0]  %s2732_s0, 1024, %s20_s26, [#allocation3], %s2284_s28, %s2284_s28, %s2285_s29  }
  0x1b   :  { %s2286_s7 = smov [#allocation7]   ;;  %s2287_s9 = smov [#allocation8]  }
  0x1c   :  { %s44_s8 = sshll.u32 %s2286_s7, 4  ;;  %s53_s1 = sshll.u32 %s2287_s9, 4  ;;  %s45_s8 = int_to_ptr.vmem [resolvable:$true] %s44_s8  ;;  %s54_s1 = int_to_ptr.vmem [resolvable:$true] %s53_s1 }
  0x1d   :  { %s2220_s10 = scalar_lea.vmem %s45_s8, 64  ;;  %p2225_p11 = scmp.lt.s32.totalorder %s45_s8, %s45_s8 }
  0x1e   :  { %p2221_p10 = scmp.ne.s32.totalorder %s45_s8, %s2220_s10  ;;  %p2226_p12 = scmp.lt.s32.totalorder %s2220_s10, %s2220_s10 }
  0x20   :  { %p2227_p13 = por %p2226_p12, %p2225_p11 }
  0x22   :  { %p2228_p0 = pnand %p2227_p13, %p2221_p10 }
  0x24   :  { %2231 = shalt.err (!%p2228_p0)
}
  0x25   :  { %47 = dma.hbm_to_vmem [thread:$0]  %s2734_s2, 64, %s45_s8, [#allocation6]  }
  0x26   :  { %s2240_s13 = scalar_lea.vmem %s54_s1, 4096  ;;  %p2245_p2 = scmp.lt.s32.totalorder %s54_s1, %s54_s1 }
  0x27   :  { %p2241_p1 = scmp.ne.s32.totalorder %s54_s1, %s2240_s13  ;;  %p2246_p3 = scmp.lt.s32.totalorder %s2240_s13, %s2240_s13 }
  0x29   :  { %p2247_p4 = por %p2246_p3, %p2245_p2 }
  0x2b   :  { %p2248_p5 = pnand %p2247_p4, %p2241_p1 }
  0x2d   :  { %2251 = shalt.err (!%p2248_p5)
}
  0x2e   :  { %59 = dma.hbm_to_vmem [thread:$0]  %s2735_s3, 4096, %s54_s1, [#allocation9], %s2284_s28, %s2284_s28, %s2285_s29  }
  0x2f   :  { %2272 = dma.done.wait [#allocation3], 1024  }
  0x30   :  { %2273 = vsyncadd [#allocation3], 4294966272 }
  0x31   :  { %2274 = dma.done.wait [#allocation6], 4160  }
  0x32   :  { %2275 = vsyncadd [#allocation6], 4294963136 }
  0x33   :  { %2276 = dma.done.wait [#allocation9], 4096  }
  0x34   :  { %2277 = vsyncadd [#allocation9], 4294963200  ;;  %v2288_v0 = vmov 0   ;;  %v1828_v1 = vld [vmem:[#allocation5 + $0xe4] ss:$16 sps:$4 sm:$0xff]   ;;  %v1884_v34 = vld [vmem:[#allocation8 + $0x78] sm:$0xff]  }
  0x35   :  { %385 = vmatprep.mubr.bf16.mxu0 %v2288_v0  ;;  %498 = vmatprep.mubr.bf16.mxu1 %v2288_v0  ;;  %v1830_v2 = vld [vmem:[#allocation5 + $0xec] ss:$16 sps:$4 sm:$0xff]   ;;  %v1832_v3 = vld [vmem:[#allocation5 + $0xe0] ss:$16 sps:$4 sm:$0xff]   ;;  %v1833_v4 = vld [vmem:[#allocation5 + $0xe8] ss:$16 sps:$4 sm:$0xff]  }
  0x36   :  { %353 = vmatprep.subr.bf16.mxu0 %v1828_v1  ;;  %466 = vmatprep.subr.bf16.mxu1 %v1830_v2  ;;  %v1834_v5 = vld [vmem:[#allocation5 + $0xc4] ss:$16 sps:$4 sm:$0xff]   ;;  %v1836_v6 = vld [vmem:[#allocation5 + $0xcc] ss:$16 sps:$4 sm:$0xff]   ;;  %v1838_v7 = vld [vmem:[#allocation5 + $0xc0] ss:$16 sps:$4 sm:$0xff]  }
  0x37   :  { %354 = vmatpush1.bf16.msra.mxu0 %v1832_v3  ;;  %467 = vmatpush1.bf16.msra.mxu1 %v1833_v4  ;;  %v1839_v8 = vld [vmem:[#allocation5 + $0xc8] ss:$16 sps:$4 sm:$0xff]   ;;  %v1840_v9 = vld [vmem:[#allocation5 + $0xa4] ss:$16 sps:$4 sm:$0xff]   ;;  %v1842_v10 = vld [vmem:[#allocation5 + $0xac] ss:$16 sps:$4 sm:$0xff]  }
  0x38   :  { %355 = vmatprep.subr.bf16.mxu0 %v1834_v5  ;;  %468 = vmatprep.subr.bf16.mxu1 %v1836_v6  ;;  %v1844_v11 = vld [vmem:[#allocation5 + $0xa0] ss:$16 sps:$4 sm:$0xff]   ;;  %v1845_v12 = vld [vmem:[#allocation5 + $0xa8] ss:$16 sps:$4 sm:$0xff]   ;;  %v1846_v13 = vld [vmem:[#allocation5 + $0x84] ss:$16 sps:$4 sm:$0xff]  }
  0x39   :  { %v1848_v14 = vld [vmem:[#allocation5 + $0x8c] ss:$16 sps:$4 sm:$0xff]   ;;  %v1850_v15 = vld [vmem:[#allocation5 + $0x80] ss:$16 sps:$4 sm:$0xff]   ;;  %v1851_v16 = vld [vmem:[#allocation5 + $0x88] ss:$16 sps:$4 sm:$0xff]  }
  0x3a   :  { %v1852_v17 = vld [vmem:[#allocation5 + $0x64] ss:$16 sps:$4 sm:$0xff]   ;;  %v1854_v18 = vld [vmem:[#allocation5 + $0x6c] ss:$16 sps:$4 sm:$0xff]   ;;  %v1856_v19 = vld [vmem:[#allocation5 + $0x60] ss:$16 sps:$4 sm:$0xff]  }
  0x3b   :  { %356 = vmatpush1.bf16.msra.mxu0 %v1838_v7  ;;  %469 = vmatpush1.bf16.msra.mxu1 %v1839_v8  ;;  %v1857_v20 = vld [vmem:[#allocation5 + $0x68] ss:$16 sps:$4 sm:$0xff]   ;;  %v1858_v21 = vld [vmem:[#allocation5 + $0x44] ss:$16 sps:$4 sm:$0xff]   ;;  %v1860_v22 = vld [vmem:[#allocation5 + $0x4c] ss:$16 sps:$4 sm:$0xff]  }
  0x3c   :  { %357 = vmatprep.subr.bf16.mxu0 %v1840_v9  ;;  %470 = vmatprep.subr.bf16.mxu1 %v1842_v10  ;;  %v1862_v23 = vld [vmem:[#allocation5 + $0x40] ss:$16 sps:$4 sm:$0xff]   ;;  %v1863_v24 = vld [vmem:[#allocation5 + $0x48] ss:$16 sps:$4 sm:$0xff]   ;;  %v1864_v25 = vld [vmem:[#allocation5 + $0x24] ss:$16 sps:$4 sm:$0xff]   ;;  %v125_v9 = vlaneseq }
  0x3d   :  { %v1866_v26 = vld [vmem:[#allocation5 + $0x2c] ss:$16 sps:$4 sm:$0xff]   ;;  %v1868_v27 = vld [vmem:[#allocation5 + $0x20] ss:$16 sps:$4 sm:$0xff]   ;;  %v1869_v28 = vld [vmem:[#allocation5 + $0x28] ss:$16 sps:$4 sm:$0xff]  }
  0x3e   :  { %v1870_v29 = vld [vmem:[#allocation5 + $0x4] ss:$16 sps:$4 sm:$0xff]   ;;  %v1872_v30 = vld [vmem:[#allocation5 + $0xc] ss:$16 sps:$4 sm:$0xff]   ;;  %v1874_v31 = vld [vmem:[#allocation5] ss:$16 sps:$4 sm:$0xff]  }
  0x3f   :  { %358 = vmatpush1.bf16.msra.mxu0 %v1844_v11  ;;  %471 = vmatpush1.bf16.msra.mxu1 %v1845_v12  ;;  %v1875_v32 = vld [vmem:[#allocation5 + $0x8] ss:$16 sps:$4 sm:$0xff]   ;;  %v1876_v33 = vld [vmem:[#allocation2] sm:$0xff]   ;;  %v1892_v42 = vld [vmem:[#allocation8 + $0x68] sm:$0xff]   ;;  %v126_v10 = vshrl.u32 %v125_v9, 7 }
  0x40   :  { %359 = vmatprep.subr.bf16.mxu0 %v1846_v13  ;;  %472 = vmatprep.subr.bf16.mxu1 %v1848_v14  ;;  %v1885_v35 = vld [vmem:[#allocation8 + $0x38] sm:$0xff]   ;;  %v1888_v38 = vld [vmem:[#allocation8 + $0x70] sm:$0xff]   ;;  %v1877_v43 = vld [vmem:[#allocation2 + $0x8] sm:$0xff]  }
  0x41   :  { %v1886_v36 = vld [vmem:[#allocation8 + $0xf8] sm:$0xff]   ;;  %v1889_v39 = vld [vmem:[#allocation8 + $0x30] sm:$0xff]   ;;  %v1893_v44 = vld [vmem:[#allocation8 + $0x28] sm:$0xff]   ;;  %v127_v11 = vsub.s32 0, %v126_v10  ;;  %v135_v12 = vsub.s32 2, %v126_v10  ;;  %v131_v14 = vsub.s32 1, %v126_v10 }
  0x42   :  { %v1887_v37 = vld [vmem:[#allocation8 + $0xb8] sm:$0xff]   ;;  %v1890_v40 = vld [vmem:[#allocation8 + $0xf0] sm:$0xff]   ;;  %v1894_v45 = vld [vmem:[#allocation8 + $0xe8] sm:$0xff]  }
  0x43   :  { %360 = vmatpush1.bf16.msra.mxu0 %v1850_v15  ;;  %473 = vmatpush1.bf16.msra.mxu1 %v1851_v16  ;;  %v1891_v41 = vld [vmem:[#allocation8 + $0xb0] sm:$0xff]   ;;  %v1880_v48 = vld [vmem:[#allocation2 + $0x20] sm:$0xff]   ;;  %v1881_v49 = vld [vmem:[#allocation2 + $0x28] sm:$0xff]   ;;  %v139_v15 = vsub.s32 3, %v126_v10 }
  0x44   :  { %361 = vmatprep.subr.bf16.mxu0 %v1852_v17  ;;  %474 = vmatprep.subr.bf16.mxu1 %v1854_v18  ;;  %v1878_v46 = vld [vmem:[#allocation2 + $0x10] sm:$0xff]   ;;  %v1879_v47 = vld [vmem:[#allocation2 + $0x18] sm:$0xff]   ;;  %v1896_v53 = vld [vmem:[#allocation8 + $0x60] sm:$0xff]  }
  0x45   :  { %v1882_v50 = vld [vmem:[#allocation2 + $0x30] sm:$0xff]   ;;  %v1883_v51 = vld [vmem:[#allocation2 + $0x38] sm:$0xff]   ;;  %v1898_v54 = vld [vmem:[#allocation8 + $0xe0] sm:$0xff]  }
  0x46   :  { %v1895_v52 = vld [vmem:[#allocation8 + $0xa8] sm:$0xff]   ;;  %v1897_v55 = vld [vmem:[#allocation8 + $0x20] sm:$0xff]   ;;  %v1900_v57 = vld [vmem:[#allocation8 + $0x58] sm:$0xff]  }
  0x47   :  { %362 = vmatpush1.bf16.msra.mxu0 %v1856_v19  ;;  %475 = vmatpush1.bf16.msra.mxu1 %v1857_v20  ;;  %v1899_v56 = vld [vmem:[#allocation8 + $0xa0] sm:$0xff]   ;;  %v1902_v58 = vld [vmem:[#allocation8 + $0xd8] sm:$0xff]   ;;  %v1904_v61 = vld [vmem:[#allocation8 + $0x50] sm:$0xff]  }
  0x48   :  { %363 = vmatprep.subr.bf16.mxu0 %v1858_v21  ;;  %476 = vmatprep.subr.bf16.mxu1 %v1860_v22  ;;  %v1901_v59 = vld [vmem:[#allocation8 + $0x18] sm:$0xff]   ;;  %v1906_v62 = vld [vmem:[#allocation8 + $0xd0] sm:$0xff]   ;;  %v1908_v1 = vld [vmem:[#allocation8 + $0x48] sm:$0xff]  }
  0x49   :  { %v1903_v60 = vld [vmem:[#allocation8 + $0x98] sm:$0xff]   ;;  %v1905_v63 = vld [vmem:[#allocation8 + $0x10] sm:$0xff]   ;;  %v1910_v2 = vld [vmem:[#allocation8 + $0xc8] sm:$0xff]  }
  0x4a   :  { %v1909_v3 = vld [vmem:[#allocation8 + $0x8] sm:$0xff]   ;;  %v1912_v5 = vld [vmem:[#allocation8 + $0x40] sm:$0xff]   ;;  %v123_v13 = vld [vmem:[#allocation7] sm:$0xf] }
  0x4b   :  { %364 = vmatpush1.bf16.msra.mxu0 %v1862_v23  ;;  %477 = vmatpush1.bf16.msra.mxu1 %v1863_v24  ;;  %v1911_v4 = vld [vmem:[#allocation8 + $0x88] sm:$0xff]   ;;  %v1914_v6 = vld [vmem:[#allocation8 + $0xc0] sm:$0xff]   ;;  %v2350_v16 = vrot.slane %v123_v13, %v127_v11  ;;  %v2352_v17 = vrot.slane %v123_v13, %v135_v12  ;;  %v2354_v18 = vrot.slane %v123_v13, %v131_v14 }
  0x4c   :  { %365 = vmatprep.subr.bf16.mxu0 %v1864_v25  ;;  %478 = vmatprep.subr.bf16.mxu1 %v1866_v26  ;;  %v1913_v7 = vld [vmem:[#allocation8] sm:$0xff]   ;;  %v2356_v19 = vrot.slane %v123_v13, %v139_v15 }
  0x4d   :  { %v1915_v8 = vld [vmem:[#allocation8 + $0x80] sm:$0xff]  }
  0x4f   :  { %366 = vmatpush1.bf16.msra.mxu0 %v1868_v27  ;;  %479 = vmatpush1.bf16.msra.mxu1 %v1869_v28 }
  0x50   :  { %367 = vmatprep.subr.bf16.mxu0 %v1870_v29  ;;  %480 = vmatprep.subr.bf16.mxu1 %v1872_v30 }
  0x53   :  { %368 = vmatpush1.bf16.msra.mxu0 %v1874_v31  ;;  %481 = vmatpush1.bf16.msra.mxu1 %v1875_v32 }
  0x54   :  { %1688 = vmatprep.subr.bf16.mxu0 %v1884_v34  ;;  %1752 = vmatprep.subr.bf16.mxu1 %v1886_v36 }
  0x56   :  { %386 = vmatmul.mubr.bf16.vlgmr.msra.gmra.mxu0 %v1876_v33  ;;  %499 = vmatmul.mubr.bf16.vlgmr.msra.gmra.mxu1 %v1876_v33 }
  0x57   :  { %395 = vmatprep.mubr.bf16.mxu0 %v2288_v0  ;;  %508 = vmatprep.mubr.bf16.mxu1 %v2288_v0 }
  0x58   :  { %1689 = vmatpush3.bf16.msra.mxu0 %v1885_v35  ;;  %1753 = vmatpush3.bf16.msra.mxu1 %v1887_v37 }
  0x59   :  { %1690 = vmatprep.subr.bf16.mxu0 %v1888_v38  ;;  %1754 = vmatprep.subr.bf16.mxu1 %v1890_v40 }
  0x5c   :  { %1691 = vmatpush3.bf16.msra.mxu0 %v1889_v39  ;;  %1755 = vmatpush3.bf16.msra.mxu1 %v1891_v41 }
  0x5d   :  { %1692 = vmatprep.subr.bf16.mxu0 %v1892_v42  ;;  %1756 = vmatprep.subr.bf16.mxu1 %v1894_v45 }
  0x5e   :  { %396 = vmatmul.mubr.bf16.gmra.mxu0 %v1877_v43  ;;  %509 = vmatmul.mubr.bf16.gmra.mxu1 %v1877_v43 }
  0x5f   :  { %405 = vmatprep.mubr.bf16.mxu0 %v2288_v0  ;;  %518 = vmatprep.mubr.bf16.mxu1 %v2288_v0 }
  0x60   :  { %1693 = vmatpush3.bf16.msra.mxu0 %v1893_v44  ;;  %1757 = vmatpush3.bf16.msra.mxu1 %v1895_v52 }
  0x61   :  { %1694 = vmatprep.subr.bf16.mxu0 %v1896_v53  ;;  %1758 = vmatprep.subr.bf16.mxu1 %v1898_v54 }
  0x64   :  { %1695 = vmatpush3.bf16.msra.mxu0 %v1897_v55  ;;  %1759 = vmatpush3.bf16.msra.mxu1 %v1899_v56 }
  0x65   :  { %1696 = vmatprep.subr.bf16.mxu0 %v1900_v57  ;;  %1760 = vmatprep.subr.bf16.mxu1 %v1902_v58 }
  0x66   :  { %406 = vmatmul.mubr.bf16.gmra.mxu0 %v1878_v46  ;;  %519 = vmatmul.mubr.bf16.gmra.mxu1 %v1878_v46 }
  0x67   :  { %415 = vmatprep.mubr.bf16.mxu0 %v2288_v0  ;;  %528 = vmatprep.mubr.bf16.mxu1 %v2288_v0 }
  0x68   :  { %1697 = vmatpush3.bf16.msra.mxu0 %v1901_v59  ;;  %1761 = vmatpush3.bf16.msra.mxu1 %v1903_v60 }
  0x69   :  { %1698 = vmatprep.subr.bf16.mxu0 %v1904_v61  ;;  %1762 = vmatprep.subr.bf16.mxu1 %v1906_v62 }
  0x6c   :  { %1699 = vmatpush3.bf16.msra.mxu0 %v1905_v63 }
  0x6d   :  { %1700 = vmatprep.subr.bf16.mxu0 %v1908_v1 }
  0x6e   :  { %416 = vmatmul.mubr.bf16.gmra.mxu0 %v1879_v47  ;;  %529 = vmatmul.mubr.bf16.gmra.mxu1 %v1879_v47 }
  0x6f   :  { %425 = vmatprep.mubr.bf16.mxu0 %v2288_v0  ;;  %538 = vmatprep.mubr.bf16.mxu1 %v2288_v0 }
  0x70   :  { %1701 = vmatpush3.bf16.msra.mxu0 %v1909_v3 }
  0x71   :  { %1702 = vmatprep.subr.bf16.mxu0 %v1912_v5 }
  0x74   :  { %1703 = vmatpush3.bf16.msra.mxu0 %v1913_v7 }
  0x76   :  { %426 = vmatmul.mubr.bf16.gmra.mxu0 %v1880_v48  ;;  %539 = vmatmul.mubr.bf16.gmra.mxu1 %v1880_v48 }
  0x77   :  { %435 = vmatprep.mubr.bf16.mxu0 %v2288_v0  ;;  %548 = vmatprep.mubr.bf16.mxu1 %v2288_v0 }
  0x7e   :  { %436 = vmatmul.mubr.bf16.gmra.mxu0 %v1881_v49  ;;  %549 = vmatmul.mubr.bf16.gmra.mxu1 %v1881_v49 }
  0x7f   :  { %445 = vmatprep.mubr.bf16.mxu0 %v2288_v0  ;;  %558 = vmatprep.mubr.bf16.mxu1 %v2288_v0 }
  0x86   :  { %446 = vmatmul.mubr.bf16.gmra.mxu0 %v1882_v50  ;;  %559 = vmatmul.mubr.bf16.gmra.mxu1 %v1882_v50 }
  0x87   :  { %455 = vmatprep.mubr.bf16.mxu0 %v2288_v0  ;;  %568 = vmatprep.mubr.bf16.mxu1 %v2288_v0  ;;  %v1907_v0 = vld [vmem:[#allocation8 + $0x90] sm:$0xff]  }
  0x88   :  { %1763 = vmatpush3.bf16.msra.mxu1 %v1907_v0 }
  0x89   :  { %1764 = vmatprep.subr.bf16.mxu1 %v1910_v2 }
  0x8c   :  { %1765 = vmatpush3.bf16.msra.mxu1 %v1911_v4 }
  0x8d   :  { %1766 = vmatprep.subr.bf16.mxu1 %v1914_v6 }
  0x8e   :  { %456 = vmatmul.mubr.bf16.gmra.mxu0 %v1883_v51  ;;  %569 = vmatmul.mubr.bf16.gmra.mxu1 %v1883_v51 }
  0x90   :  { %1767 = vmatpush3.bf16.msra.mxu1 %v1915_v8 }
 0x116   :  { %v387_v20 = vpop.f32.mrf.mxu0  ;;  %v500_v21 = vpop.f32.mrf.mxu1 }
 0x117   :  { %v2359_v22 = vadd.f32 %v387_v20, %v2350_v16  ;;  %v2362_v23 = vadd.f32 %v500_v21, %v2352_v17 }
 0x118   :  { %v389_v24 = vpop.f32.mrf.mxu0  ;;  %v502_v25 = vpop.f32.mrf.mxu1 }
 0x119   :  { %v1591_v26 = vmul.f32 -1.442695, %v2359_v22  ;;  %v1593_v27 = vmul.f32 -1.442695, %v2362_v23  ;;  %v2367_v28 = vadd.f32 %v389_v24, %v2354_v18  ;;  %v2370_v29 = vadd.f32 %v502_v25, %v2356_v19 }
 0x11a   :  { %v391_v30 = vpop.f32.mrf.mxu0  ;;  %v504_v31 = vpop.f32.mrf.mxu1 }
 0x11b   :  { %1916 = vpow2.f32 %v1591_v26  ;;  %v1592_v32 = vmul.f32 -1.442695, %v2367_v28  ;;  %v1594_v33 = vmul.f32 -1.442695, %v2370_v29  ;;  %v2375_v34 = vadd.f32 %v391_v30, %v2350_v16 }
 0x11c   :  { %1918 = vpow2.f32 %v1593_v27  ;;  %v2378_v35 = vadd.f32 %v504_v31, %v2352_v17  ;;  %v393_v36 = vpop.f32.mrf.mxu0  ;;  %v506_v37 = vpop.f32.mrf.mxu1 }
 0x11d   :  { %1920 = vpow2.f32 %v1592_v32  ;;  %v1595_v38 = vmul.f32 -1.442695, %v2375_v34  ;;  %v2382_v39 = vadd.f32 %v393_v36, %v2354_v18  ;;  %v2385_v40 = vadd.f32 %v506_v37, %v2356_v19 }
 0x11e   :  { %1922 = vpow2.f32 %v1594_v33  ;;  %v1597_v41 = vmul.f32 -1.442695, %v2378_v35  ;;  %v397_v42 = vpop.f32.mrf.mxu0  ;;  %v510_v43 = vpop.f32.mrf.mxu1 }
 0x11f   :  { %1924 = vpow2.f32 %v1595_v38  ;;  %v1596_v44 = vmul.f32 -1.442695, %v2382_v39  ;;  %v1598_v45 = vmul.f32 -1.442695, %v2385_v40  ;;  %v2391_v46 = vadd.f32 %v397_v42, %v2350_v16 }
 0x120   :  { %1926 = vpow2.f32 %v1597_v41  ;;  %v2394_v47 = vadd.f32 %v510_v43, %v2352_v17  ;;  %v399_v48 = vpop.f32.mrf.mxu0  ;;  %v512_v49 = vpop.f32.mrf.mxu1 }
 0x121   :  { %1928 = vpow2.f32 %v1596_v44  ;;  %v1599_v50 = vmul.f32 -1.442695, %v2391_v46  ;;  %v2398_v51 = vadd.f32 %v399_v48, %v2354_v18  ;;  %v2401_v52 = vadd.f32 %v512_v49, %v2356_v19 }
 0x122   :  { %1930 = vpow2.f32 %v1598_v45  ;;  %v1601_v53 = vmul.f32 -1.442695, %v2394_v47  ;;  %v401_v54 = vpop.f32.mrf.mxu0  ;;  %v514_v55 = vpop.f32.mrf.mxu1 }
 0x123   :  { %1932 = vpow2.f32 %v1599_v50  ;;  %v1600_v56 = vmul.f32 -1.442695, %v2398_v51  ;;  %v1602_v57 = vmul.f32 -1.442695, %v2401_v52  ;;  %v2407_v58 = vadd.f32 %v401_v54, %v2350_v16 }
 0x124   :  { %1934 = vpow2.f32 %v1601_v53  ;;  %v2410_v59 = vadd.f32 %v514_v55, %v2352_v17  ;;  %v403_v60 = vpop.f32.mrf.mxu0  ;;  %v516_v61 = vpop.f32.mrf.mxu1 }
 0x125   :  { %1936 = vpow2.f32 %v1600_v56  ;;  %v1603_v62 = vmul.f32 -1.442695, %v2407_v58  ;;  %v2414_v63 = vadd.f32 %v403_v60, %v2354_v18  ;;  %v2417_v0 = vadd.f32 %v516_v61, %v2356_v19 }
 0x126   :  { %1938 = vpow2.f32 %v1602_v57  ;;  %v1605_v1 = vmul.f32 -1.442695, %v2410_v59  ;;  %v407_v2 = vpop.f32.mrf.mxu0  ;;  %v520_v3 = vpop.f32.mrf.mxu1 }
 0x127   :  { %1940 = vpow2.f32 %v1603_v62  ;;  %v1604_v4 = vmul.f32 -1.442695, %v2414_v63  ;;  %v1606_v5 = vmul.f32 -1.442695, %v2417_v0  ;;  %v2423_v53 = vadd.f32 %v407_v2, %v2350_v16 }
 0x128   :  { %v1917_v6 = vpop.eup %1916  ;;  %1942 = vpow2.f32 %v1605_v1  ;;  %v409_v7 = vpop.f32.mrf.mxu0  ;;  %v2426_v56 = vadd.f32 %v520_v3, %v2352_v17 }
 0x129   :  { %v522_v8 = vpop.f32.mrf.mxu1  ;;  %v1919_v9 = vpop.eup %1918  ;;  %v771_v10 = vadd.f32 1.0, %v1917_v6  ;;  %1944 = vpow2.f32 %v1604_v4  ;;  %v2429_v61 = vadd.f32 %v409_v7, %v2354_v18  ;;  %v1607_v3 = vmul.f32 -1.442695, %v2423_v53 }
 0x12a   :  { %v1921_v11 = vpop.eup %1920  ;;  %v773_v12 = vadd.f32 1.0, %v1919_v9  ;;  %1946 = vpow2.f32 %v1606_v5  ;;  %v411_v13 = vpop.f32.mrf.mxu0  ;;  %v2432_v4 = vadd.f32 %v522_v8, %v2356_v19 }
 0x12b   :  { %v524_v14 = vpop.f32.mrf.mxu1  ;;  %v1923_v15 = vpop.eup %1922  ;;  %1948 = vrcp.f32 %v771_v10  ;;  %v772_v20 = vadd.f32 1.0, %v1921_v11  ;;  %v2436_v10 = vadd.f32 %v411_v13, %v2350_v16 }
 0x12c   :  { %v1925_v21 = vpop.eup %1924  ;;  %1950 = vrcp.f32 %v773_v12  ;;  %v774_v24 = vadd.f32 1.0, %v1923_v15  ;;  %v413_v31 = vpop.f32.mrf.mxu0  ;;  %v1609_v12 = vmul.f32 -1.442695, %v2426_v56  ;;  %v2442_v15 = vadd.f32 %v524_v14, %v2352_v17 }
 0x12d   :  { %v1927_v25 = vpop.eup %1926  ;;  %1952 = vrcp.f32 %v772_v20  ;;  %v775_v26 = vadd.f32 1.0, %v1925_v21  ;;  %v526_v32 = vpop.f32.mrf.mxu1  ;;  %v1608_v20 = vmul.f32 -1.442695, %v2429_v61  ;;  %v2446_v21 = vadd.f32 %v413_v31, %v2354_v18 }
 0x12e   :  { %v1929_v27 = vpop.eup %1928  ;;  %1954 = vrcp.f32 %v774_v24  ;;  %v777_v30 = vadd.f32 1.0, %v1927_v25  ;;  %v417_v45 = vpop.f32.mrf.mxu0  ;;  %v1610_v13 = vmul.f32 -1.442695, %v2432_v4  ;;  %v2450_v25 = vadd.f32 %v526_v32, %v2356_v19 }
 0x12f   :  { %v1931_v33 = vpop.eup %1930  ;;  %1956 = vrcp.f32 %v775_v26  ;;  %v776_v36 = vadd.f32 1.0, %v1929_v27  ;;  %v530_v48 = vpop.f32.mrf.mxu1  ;;  %v1611_v14 = vmul.f32 -1.442695, %v2436_v10  ;;  %v1613_v31 = vmul.f32 -1.442695, %v2442_v15 }
 0x130   :  { %v1933_v37 = vpop.eup %1932  ;;  %1958 = vrcp.f32 %v777_v30  ;;  %v778_v38 = vadd.f32 1.0, %v1931_v33  ;;  %v419_v2 = vpop.f32.mrf.mxu0  ;;  %v2454_v33 = vadd.f32 %v417_v45, %v2350_v16  ;;  %v1612_v32 = vmul.f32 -1.442695, %v2446_v21 }
 0x131   :  { %v1935_v41 = vpop.eup %1934  ;;  %1960 = vrcp.f32 %v776_v36  ;;  %v779_v42 = vadd.f32 1.0, %v1933_v37  ;;  %v532_v5 = vpop.f32.mrf.mxu1  ;;  %v2458_v37 = vadd.f32 %v530_v48, %v2352_v17 }
 0x132   :  { %v1937_v43 = vpop.eup %1936  ;;  %1962 = vrcp.f32 %v778_v38  ;;  %v781_v44 = vadd.f32 1.0, %v1935_v41  ;;  %v421_v26 = vpop.f32.mrf.mxu0  ;;  %v2462_v41 = vadd.f32 %v419_v2, %v2354_v18  ;;  %v1615_v48 = vmul.f32 -1.442695, %v2454_v33 }
 0x133   :  { %v1939_v49 = vpop.eup %1938  ;;  %1964 = vrcp.f32 %v779_v42  ;;  %v780_v50 = vadd.f32 1.0, %v1937_v43  ;;  %v534_v27 = vpop.f32.mrf.mxu1  ;;  %v2465_v42 = vadd.f32 %v532_v5, %v2356_v19 }
 0x134   :  { %v1941_v54 = vpop.eup %1940  ;;  %1966 = vrcp.f32 %v781_v44  ;;  %v782_v55 = vadd.f32 1.0, %v1939_v49  ;;  %v1614_v44 = vmul.f32 -1.442695, %v2450_v25  ;;  %v423_v45 = vpop.f32.mrf.mxu0 }
 0x135   :  { %v1943_v57 = vpop.eup %1942  ;;  %1968 = vrcp.f32 %v780_v50  ;;  %v783_v60 = vadd.f32 1.0, %v1941_v54  ;;  %v536_v49 = vpop.f32.mrf.mxu1  ;;  %v2470_v54 = vadd.f32 %v421_v26, %v2350_v16  ;;  %v1618_v2 = vmul.f32 -1.442695, %v2465_v42 }
 0x136   :  { %v1945_v62 = vpop.eup %1944  ;;  %1970 = vrcp.f32 %v782_v55  ;;  %v785_v1 = vadd.f32 1.0, %v1943_v57  ;;  %v1617_v57 = vmul.f32 -1.442695, %v2458_v37  ;;  %v2483_v5 = vadd.f32 %v423_v45, %v2354_v18 }
 0x137   :  { %v1947_v6 = vpop.eup %1946  ;;  %1972 = vrcp.f32 %v783_v60  ;;  %v784_v9 = vadd.f32 1.0, %v1945_v62  ;;  %v2476_v60 = vadd.f32 %v534_v27, %v2352_v17 }
 0x138   :  { %v2438_v11 = vpop.eup %1948  ;;  %1974 = vrcp.f32 %v785_v1  ;;  %v786_v7 = vadd.f32 1.0, %v1947_v6  ;;  %v1616_v1 = vmul.f32 -1.442695, %v2462_v41 }
 0x139   :  { %v1951_v8 = vpop.eup %1950  ;;  %1976 = vrcp.f32 %v784_v9 }
 0x13a   :  { %v1953_v24 = vpop.eup %1952  ;;  %1978 = vrcp.f32 %v786_v7  ;;  %v2488_v7 = vadd.f32 %v536_v49, %v2356_v19  ;;  %v965_v45 = vmul.f32 %v1951_v8, %v2362_v23 }
 0x13b   :  { %v1955_v30 = vpop.eup %1954  ;;  %1980 = vpow2.f32 %v1607_v3 }
 0x13c   :  { %v1957_v36 = vpop.eup %1956  ;;  %1982 = vpow2.f32 %v1609_v12  ;;  %v427_v12 = vpop.f32.mrf.mxu0 }
 0x13d   :  { %v1959_v38 = vpop.eup %1958  ;;  %1984 = vpow2.f32 %v1608_v20  ;;  %v2490_v20 = vpop.f32.mrf.mxu1  ;;  %v967_v26 = vmul.f32 %v1957_v36, %v2375_v34  ;;  %v1620_v34 = vmul.f32 -1.442695, %v2483_v5  ;;  %v1622_v36 = vmul.f32 -1.442695, %v2488_v7 }
 0x13e   :  { %v1961_v43 = vpop.eup %1960  ;;  %1986 = vpow2.f32 %v1610_v13  ;;  %v969_v27 = vmul.f32 %v1959_v38, %v2378_v35  ;;  %v429_v38 = vpop.f32.mrf.mxu0 }
 0x13f   :  { %v1963_v50 = vpop.eup %1962  ;;  %1988 = vpow2.f32 %v1611_v14  ;;  %v968_v9 = vmul.f32 %v1961_v43, %v2382_v39  ;;  %v1619_v14 = vmul.f32 -1.442695, %v2470_v54  ;;  %v964_v39 = vmul.f32 %v1953_v24, %v2367_v28  ;;  %v2503_v28 = vpop.f32.mrf.mxu1 }
 0x140   :  { %v2472_v55 = vpop.eup %1964  ;;  %1990 = vpow2.f32 %v1613_v31  ;;  %v970_v3 = vmul.f32 %v1963_v50, %v2385_v40  ;;  %v966_v40 = vmul.f32 %v1955_v30, %v2370_v29  ;;  %v1029_v50 = vpack.c.bf16 %v969_v27, %v965_v45 }
 0x141   :  { %v2478_v62 = vpop.eup %1966  ;;  %1992 = vpow2.f32 %v1612_v32  ;;  %v1621_v32 = vmul.f32 -1.442695, %v2476_v60  ;;  %v1028_v29 = vpack.c.bf16 %v968_v9, %v964_v39 }
 0x142   :  { %v1969_v6 = vpop.eup %1968  ;;  %1994 = vpow2.f32 %v1614_v44  ;;  %v963_v44 = vmul.f32 %v2438_v11, %v2359_v22  ;;  %v1030_v24 = vpack.c.bf16 %v970_v3, %v966_v40  ;;  %v2510_v3 = vadd.f32 %v427_v12, %v2350_v16 }
 0x143   :  { %v1971_v13 = vpop.eup %1970  ;;  %1996 = vpow2.f32 %v1615_v48  ;;  %1354 = vmatprep.mubr.bf16.mxu0 %v1028_v29 }
 0x144   :  { %v1973_v31 = vpop.eup %1972  ;;  %1998 = vpow2.f32 %v1617_v57  ;;  %v1027_v49 = vpack.c.bf16 %v967_v26, %v963_v44  ;;  %1451 = vmatprep.mubr.bf16.mxu1 %v1030_v24  ;;  %v2505_v57 = vpop.f32.mrf.mxu0  ;;  %v974_v44 = vmul.f32 %v1971_v13, %v2401_v52 }
 0x145   :  { %v1975_v43 = vpop.eup %1974  ;;  %2000 = vpow2.f32 %v1616_v1  ;;  %1452 = vmatmul.mubr.bf16.vlgmr.msra.gmra.mxu1 %v1029_v50  ;;  %v2507_v1 = vpop.f32.mrf.mxu1 }
 0x146   :  { %v1977_v35 = vpop.eup %1976  ;;  %2002 = vpow2.f32 %v1618_v2  ;;  %1355 = vmatmul.mubr.bf16.vlgmr.msra.gmra.mxu0 %v1027_v49  ;;  %v977_v12 = vmul.f32 %v1975_v43, %v2410_v59  ;;  %v433_v24 = vpop.f32.mrf.mxu0  ;;  %v2524_v43 = vadd.f32 %v2490_v20, %v2352_v17  ;;  %v2527_v49 = vadd.f32 %v429_v38, %v2354_v18 }
 0x147   :  { %v1979_v30 = vpop.eup %1978  ;;  %2004 = vpow2.f32 %v1619_v14  ;;  %v976_v27 = vmul.f32 %v1977_v35, %v2414_v63  ;;  %v546_v63 = vpop.f32.mrf.mxu1  ;;  %v1623_v20 = vmul.f32 -1.442695, %v2510_v3 }
 0x148   :  { %v1981_v48 = vpop.eup %1980  ;;  %2006 = vpow2.f32 %v1621_v32  ;;  %v978_v14 = vmul.f32 %v1979_v30, %v2417_v0  ;;  %v972_v32 = vmul.f32 %v1969_v6, %v2398_v51  ;;  %v971_v0 = vmul.f32 %v2472_v55, %v2391_v46  ;;  %v437_v55 = vpop.f32.mrf.mxu0 }
 0x149   :  { %v1983_v22 = vpop.eup %1982  ;;  %v787_v23 = vadd.f32 1.0, %v1981_v48  ;;  %2008 = vpow2.f32 %v1620_v34  ;;  %v973_v51 = vmul.f32 %v2478_v62, %v2394_v47  ;;  %v550_v62 = vpop.f32.mrf.mxu1 }
 0x14a   :  { %v1985_v11 = vpop.eup %1984  ;;  %v789_v8 = vadd.f32 1.0, %v1983_v22  ;;  %2010 = vpow2.f32 %v1622_v36  ;;  %v975_v36 = vmul.f32 %v1973_v31, %v2407_v58  ;;  %v1032_v30 = vpack.c.bf16 %v976_v27, %v972_v32  ;;  %v439_v32 = vpop.f32.mrf.mxu0 }
 0x14b   :  { %v1987_v2 = vpop.eup %1986  ;;  %2012 = vrcp.f32 %v787_v23  ;;  %v788_v9 = vadd.f32 1.0, %v1985_v11  ;;  %v1034_v58 = vpack.c.bf16 %v978_v14, %v974_v44  ;;  %v1033_v48 = vpack.c.bf16 %v977_v12, %v973_v51  ;;  %v552_v44 = vpop.f32.mrf.mxu1 }
 0x14c   :  { %v1989_v26 = vpop.eup %1988  ;;  %2014 = vrcp.f32 %v789_v8  ;;  %v790_v39 = vadd.f32 1.0, %v1987_v2  ;;  %1362 = vmatprep.mubr.bf16.mxu0 %v1032_v30  ;;  %v1031_v50 = vpack.c.bf16 %v975_v36, %v971_v0  ;;  %v2542_v36 = vadd.f32 %v2507_v1, %v2352_v17 }
 0x14d   :  { %v1991_v40 = vpop.eup %1990  ;;  %2016 = vrcp.f32 %v788_v9  ;;  %v791_v45 = vadd.f32 1.0, %v1989_v26  ;;  %1459 = vmatprep.mubr.bf16.mxu1 %v1034_v58  ;;  %v1625_v9 = vmul.f32 -1.442695, %v2524_v43  ;;  %v2533_v26 = vadd.f32 %v2503_v28, %v2356_v19 }
 0x14e   :  { %v1993_v34 = vpop.eup %1992  ;;  %2018 = vrcp.f32 %v790_v39  ;;  %v793_v29 = vadd.f32 1.0, %v1991_v40  ;;  %1363 = vmatmul.mubr.bf16.gmra.mxu0 %v1031_v50  ;;  %1460 = vmatmul.mubr.bf16.gmra.mxu1 %v1033_v48  ;;  %v1624_v39 = vmul.f32 -1.442695, %v2527_v49  ;;  %v2538_v40 = vadd.f32 %v2505_v57, %v2350_v16 }
 0x14f   :  { %v1995_v35 = vpop.eup %1994  ;;  %2020 = vrcp.f32 %v791_v45  ;;  %v792_v52 = vadd.f32 1.0, %v1993_v34  ;;  %v2545_v28 = vadd.f32 %v433_v24, %v2354_v18  ;;  %v2551_v57 = vadd.f32 %v437_v55, %v2350_v16 }
 0x150   :  { %v1997_v6 = vpop.eup %1996  ;;  %2022 = vrcp.f32 %v793_v29  ;;  %v794_v13 = vadd.f32 1.0, %v1995_v35  ;;  %v2548_v35 = vadd.f32 %v546_v63, %v2356_v19  ;;  %v2554_v51 = vadd.f32 %v550_v62, %v2352_v17  ;;  %v441_v63 = vpop.f32.mrf.mxu0 }
 0x151   :  { %v1999_v31 = vpop.eup %1998  ;;  %2024 = vrcp.f32 %v792_v52  ;;  %v795_v59 = vadd.f32 1.0, %v1997_v6  ;;  %v2557_v1 = vadd.f32 %v439_v32, %v2354_v18  ;;  %v2560_v24 = vadd.f32 %v552_v44, %v2356_v19 }
 0x152   :  { %v2001_v46 = vpop.eup %2000  ;;  %2026 = vrcp.f32 %v794_v13  ;;  %v797_v47 = vadd.f32 1.0, %v1999_v31  ;;  %v1626_v6 = vmul.f32 -1.442695, %v2533_v26  ;;  %v554_v13 = vpop.f32.mrf.mxu1  ;;  %v1627_v58 = vmul.f32 -1.442695, %v2538_v40 }
 0x153   :  { %v2003_v22 = vpop.eup %2002  ;;  %2028 = vrcp.f32 %v795_v59  ;;  %v796_v23 = vadd.f32 1.0, %v2001_v46  ;;  %v1629_v31 = vmul.f32 -1.442695, %v2542_v36  ;;  %v1628_v46 = vmul.f32 -1.442695, %v2545_v28 }
 0x154   :  { %v2005_v11 = vpop.eup %2004  ;;  %2030 = vrcp.f32 %v797_v47  ;;  %v798_v8 = vadd.f32 1.0, %v2003_v22  ;;  %v1630_v47 = vmul.f32 -1.442695, %v2548_v35  ;;  %v1631_v55 = vmul.f32 -1.442695, %v2551_v57 }
 0x155   :  { %v2007_v38 = vpop.eup %2006  ;;  %2032 = vrcp.f32 %v796_v23  ;;  %v799_v2 = vadd.f32 1.0, %v2005_v11  ;;  %v1633_v50 = vmul.f32 -1.442695, %v2554_v51  ;;  %v1632_v48 = vmul.f32 -1.442695, %v2557_v1 }
 0x156   :  { %v2009_v27 = vpop.eup %2008  ;;  %2034 = vrcp.f32 %v798_v8  ;;  %v801_v14 = vadd.f32 1.0, %v2007_v38  ;;  %v1634_v22 = vmul.f32 -1.442695, %v2560_v24  ;;  %v2573_v8 = vadd.f32 %v441_v63, %v2350_v16  ;;  %v443_v38 = vpop.f32.mrf.mxu0 }
 0x157   :  { %v2011_v45 = vpop.eup %2010  ;;  %2036 = vrcp.f32 %v799_v2  ;;  %v800_v34 = vadd.f32 1.0, %v2009_v27  ;;  %v556_v2 = vpop.f32.mrf.mxu1 }
 0x158   :  { %v2013_v12 = vpop.eup %2012  ;;  %2038 = vrcp.f32 %v801_v14  ;;  %v802_v29 = vadd.f32 1.0, %v2011_v45 }
 0x159   :  { %v2015_v0 = vpop.eup %2014  ;;  %2040 = vrcp.f32 %v800_v34 }
 0x15a   :  { %v2017_v52 = vpop.eup %2016  ;;  %2042 = vrcp.f32 %v802_v29  ;;  %v981_v29 = vmul.f32 %v2015_v0, %v2426_v56  ;;  %v1635_v56 = vmul.f32 -1.442695, %v2573_v8 }
 0x15b   :  { %v2019_v30 = vpop.eup %2018  ;;  %2044 = vpow2.f32 %v1623_v20  ;;  %v2576_v20 = vadd.f32 %v554_v13, %v2352_v17  ;;  %v980_v27 = vmul.f32 %v2017_v52, %v2429_v61  ;;  %v2591_v52 = vpop.f32.mrf.mxu0 }
 0x15c   :  { %v2021_v59 = vpop.eup %2020  ;;  %2046 = vpow2.f32 %v1625_v9  ;;  %v982_v44 = vmul.f32 %v2019_v30, %v2432_v4 }
 0x15d   :  { %v2023_v62 = vpop.eup %2022  ;;  %2048 = vpow2.f32 %v1624_v39  ;;  %v983_v11 = vmul.f32 %v2021_v59, %v2436_v10  ;;  %v979_v10 = vmul.f32 %v2013_v12, %v2423_v53  ;;  %v2593_v53 = vpop.f32.mrf.mxu1  ;;  %v1637_v13 = vmul.f32 -1.442695, %v2576_v20 }
 0x15e   :  { %v2025_v23 = vpop.eup %2024  ;;  %2050 = vpow2.f32 %v1626_v6  ;;  %v985_v14 = vmul.f32 %v2023_v62, %v2442_v15  ;;  %v2586_v6 = vadd.f32 %v443_v38, %v2354_v18 }
 0x15f   :  { %v2027_v9 = vpop.eup %2026  ;;  %v984_v39 = vmul.f32 %v2025_v23, %v2446_v21  ;;  %2052 = vpow2.f32 %v1627_v58  ;;  %v2589_v21 = vadd.f32 %v556_v2, %v2356_v19 }
 0x160   :  { %v2029_v32 = vpop.eup %2028  ;;  %v986_v45 = vmul.f32 %v2027_v9, %v2450_v25  ;;  %2054 = vpow2.f32 %v1629_v31  ;;  %v1035_v25 = vpack.c.bf16 %v983_v11, %v979_v10  ;;  %v1037_v0 = vpack.c.bf16 %v985_v14, %v981_v29 }
 0x161   :  { %v2031_v34 = vpop.eup %2030  ;;  %2056 = vpow2.f32 %v1628_v46  ;;  %v1036_v61 = vpack.c.bf16 %v984_v39, %v980_v27  ;;  %v1636_v58 = vmul.f32 -1.442695, %v2586_v6  ;;  %v1638_v46 = vmul.f32 -1.442695, %v2589_v21 }
 0x162   :  { %v2033_v15 = vpop.eup %2032  ;;  %2058 = vpow2.f32 %v1630_v47  ;;  %v1038_v4 = vpack.c.bf16 %v986_v45, %v982_v44  ;;  %v449_v47 = vpop.f32.mrf.mxu0  ;;  %v987_v38 = vmul.f32 %v2029_v32, %v2454_v33  ;;  %v989_v9 = vmul.f32 %v2031_v34, %v2458_v37 }
 0x163   :  { %v2035_v12 = vpop.eup %2034  ;;  %2060 = vpow2.f32 %v1631_v55  ;;  %1370 = vmatprep.mubr.bf16.mxu0 %v1036_v61  ;;  %v2600_v55 = vpop.f32.mrf.mxu1 }
 0x164   :  { %v2037_v63 = vpop.eup %2036  ;;  %2062 = vpow2.f32 %v1633_v50  ;;  %1467 = vmatprep.mubr.bf16.mxu1 %v1038_v4  ;;  %1371 = vmatmul.mubr.bf16.gmra.mxu0 %v1035_v25  ;;  %v988_v50 = vmul.f32 %v2033_v15, %v2462_v41  ;;  %v990_v2 = vmul.f32 %v2035_v12, %v2465_v42 }
 0x165   :  { %v2039_v30 = vpop.eup %2038  ;;  %2064 = vpow2.f32 %v1632_v48  ;;  %1468 = vmatmul.mubr.bf16.gmra.mxu1 %v1037_v0  ;;  %v991_v59 = vmul.f32 %v2037_v63, %v2470_v54  ;;  %v2611_v63 = vadd.f32 %v2591_v52, %v2350_v16 }
 0x166   :  { %v2041_v31 = vpop.eup %2040  ;;  %2066 = vpow2.f32 %v1634_v22  ;;  %v993_v23 = vmul.f32 %v2039_v30, %v2476_v60  ;;  %v451_v60 = vpop.f32.mrf.mxu0 }
 0x167   :  { %v2043_v62 = vpop.eup %2042  ;;  %v992_v11 = vmul.f32 %v2041_v31, %v2483_v5  ;;  %2068 = vpow2.f32 %v1635_v56  ;;  %v564_v5 = vpop.f32.mrf.mxu1  ;;  %v1039_v44 = vpack.c.bf16 %v991_v59, %v987_v38  ;;  %v1639_v38 = vmul.f32 -1.442695, %v2611_v63 }
 0x168   :  { %v2045_v48 = vpop.eup %2044  ;;  %v994_v54 = vmul.f32 %v2043_v62, %v2488_v7  ;;  %2070 = vpow2.f32 %v1637_v13  ;;  %v1041_v42 = vpack.c.bf16 %v993_v23, %v989_v9  ;;  %v453_v15 = vpop.f32.mrf.mxu0 }
 0x169   :  { %v2047_v22 = vpop.eup %2046  ;;  %v803_v27 = vadd.f32 1.0, %v2045_v48  ;;  %2072 = vpow2.f32 %v1636_v58  ;;  %v1040_v14 = vpack.c.bf16 %v992_v11, %v988_v50  ;;  %v566_v4 = vpop.f32.mrf.mxu1  ;;  %v2615_v58 = vadd.f32 %v2593_v53, %v2352_v17 }
 0x16a   :  { %v2049_v41 = vpop.eup %2048  ;;  %v805_v39 = vadd.f32 1.0, %v2047_v22  ;;  %2074 = vpow2.f32 %v1638_v46  ;;  %v1042_v10 = vpack.c.bf16 %v994_v54, %v990_v2  ;;  %v457_v46 = vpop.f32.mrf.mxu0  ;;  %v2618_v11 = vadd.f32 %v449_v47, %v2354_v18 }
 0x16b   :  { %v2051_v45 = vpop.eup %2050  ;;  %2076 = vrcp.f32 %v803_v27  ;;  %v804_v33 = vadd.f32 1.0, %v2049_v41  ;;  %1378 = vmatprep.mubr.bf16.mxu0 %v1040_v14  ;;  %v570_v62 = vpop.f32.mrf.mxu1  ;;  %v1641_v54 = vmul.f32 -1.442695, %v2615_v58  ;;  %v2624_v22 = vadd.f32 %v2600_v55, %v2356_v19 }
 0x16c   :  { %v2053_v7 = vpop.eup %2052  ;;  %2078 = vrcp.f32 %v805_v39  ;;  %v806_v32 = vadd.f32 1.0, %v2051_v45  ;;  %1475 = vmatprep.mubr.bf16.mxu1 %v1042_v10  ;;  %1379 = vmatmul.mubr.bf16.gmra.mxu0 %v1039_v44  ;;  %v2627_v47 = vadd.f32 %v451_v60, %v2350_v16  ;;  %v2630_v14 = vadd.f32 %v564_v5, %v2352_v17  ;;  %v459_v41 = vpop.f32.mrf.mxu0 }
 0x16d   :  { %v2055_v37 = vpop.eup %2054  ;;  %2080 = vrcp.f32 %v804_v33  ;;  %v807_v34 = vadd.f32 1.0, %v2053_v7  ;;  %1476 = vmatmul.mubr.bf16.gmra.mxu1 %v1041_v42  ;;  %v572_v39 = vpop.f32.mrf.mxu1  ;;  %v1640_v45 = vmul.f32 -1.442695, %v2618_v11  ;;  %v2634_v33 = vadd.f32 %v453_v15, %v2354_v18 }
 0x16e   :  { %v2057_v29 = vpop.eup %2056  ;;  %2082 = vrcp.f32 %v806_v32  ;;  %v809_v61 = vadd.f32 1.0, %v2055_v37  ;;  %v2637_v7 = vadd.f32 %v566_v4, %v2356_v19  ;;  %v2640_v60 = vadd.f32 %v457_v46, %v2350_v16  ;;  %v461_v15 = vpop.f32.mrf.mxu0 }
 0x16f   :  { %v2059_v25 = vpop.eup %2058  ;;  %2084 = vrcp.f32 %v807_v34  ;;  %v808_v12 = vadd.f32 1.0, %v2057_v29  ;;  %v2643_v32 = vadd.f32 %v570_v62, %v2352_v17  ;;  %v2646_v37 = vadd.f32 %v459_v41, %v2354_v18 }
 0x170   :  { %v2061_v56 = vpop.eup %2060  ;;  %2086 = vrcp.f32 %v809_v61  ;;  %v810_v0 = vadd.f32 1.0, %v2059_v25  ;;  %v2649_v34 = vadd.f32 %v572_v39, %v2356_v19  ;;  %v1642_v61 = vmul.f32 -1.442695, %v2624_v22 }
 0x171   :  { %v2063_v13 = vpop.eup %2062  ;;  %2088 = vrcp.f32 %v808_v12  ;;  %v811_v30 = vadd.f32 1.0, %v2061_v56  ;;  %v1643_v25 = vmul.f32 -1.442695, %v2627_v47  ;;  %v1645_v12 = vmul.f32 -1.442695, %v2630_v14  ;;  %v574_v56 = vpop.f32.mrf.mxu1 }
 0x172   :  { %v2065_v31 = vpop.eup %2064  ;;  %2090 = vrcp.f32 %v810_v0  ;;  %v813_v59 = vadd.f32 1.0, %v2063_v13  ;;  %v1644_v13 = vmul.f32 -1.442695, %v2634_v33  ;;  %v1649_v46 = vmul.f32 -1.442695, %v2643_v32 }
 0x173   :  { %v2067_v50 = vpop.eup %2066  ;;  %2092 = vrcp.f32 %v811_v30  ;;  %v812_v23 = vadd.f32 1.0, %v2065_v31  ;;  %v1646_v30 = vmul.f32 -1.442695, %v2637_v7  ;;  %v1647_v31 = vmul.f32 -1.442695, %v2640_v60  ;;  %v576_v41 = vpop.f32.mrf.mxu1 }
 0x174   :  { %v2069_v52 = vpop.eup %2068  ;;  %2094 = vrcp.f32 %v813_v59  ;;  %v814_v48 = vadd.f32 1.0, %v2067_v50  ;;  %v1648_v62 = vmul.f32 -1.442695, %v2646_v37  ;;  %v1650_v50 = vmul.f32 -1.442695, %v2649_v34 }
 0x175   :  { %v2071_v2 = vpop.eup %2070  ;;  %2096 = vrcp.f32 %v812_v23  ;;  %v815_v53 = vadd.f32 1.0, %v2069_v52 }
 0x176   :  { %v2073_v9 = vpop.eup %2072  ;;  %2098 = vrcp.f32 %v814_v48  ;;  %v817_v27 = vadd.f32 1.0, %v2071_v2  ;;  %v2662_v48 = vadd.f32 %v461_v15, %v2350_v16  ;;  %v463_v2 = vpop.f32.mrf.mxu0 }
 0x177   :  { %v2075_v10 = vpop.eup %2074  ;;  %2100 = vrcp.f32 %v815_v53  ;;  %v816_v44 = vadd.f32 1.0, %v2073_v9 }
 0x178   :  { %v2077_v55 = vpop.eup %2076  ;;  %2102 = vrcp.f32 %v817_v27  ;;  %v818_v42 = vadd.f32 1.0, %v2075_v10 }
 0x179   :  { %v2079_v5 = vpop.eup %2078  ;;  %2104 = vrcp.f32 %v816_v44 }
 0x17a   :  { %v2081_v29 = vpop.eup %2080  ;;  %2106 = vrcp.f32 %v818_v42  ;;  %v997_v44 = vmul.f32 %v2079_v5, %v2524_v43 }
 0x17b   :  { %v2083_v4 = vpop.eup %2082  ;;  %2108 = vpow2.f32 %v1639_v38  ;;  %v2665_v38 = vadd.f32 %v574_v56, %v2352_v17 }
 0x17c   :  { %v2085_v0 = vpop.eup %2084  ;;  %2110 = vpow2.f32 %v1641_v54  ;;  %v996_v54 = vmul.f32 %v2081_v29, %v2527_v49  ;;  %v998_v10 = vmul.f32 %v2083_v4, %v2533_v26  ;;  %v2675_v49 = vadd.f32 %v463_v2, %v2354_v18 }
 0x17d   :  { %v2087_v59 = vpop.eup %2086  ;;  %2112 = vpow2.f32 %v1640_v45  ;;  %v999_v52 = vmul.f32 %v2085_v0, %v2538_v40  ;;  %v995_v40 = vmul.f32 %v2077_v55, %v2510_v3  ;;  %v1651_v26 = vmul.f32 -1.442695, %v2662_v48 }
 0x17e   :  { %v2089_v23 = vpop.eup %2088  ;;  %2114 = vpow2.f32 %v1642_v61  ;;  %v1001_v9 = vmul.f32 %v2087_v59, %v2542_v36  ;;  %v1653_v43 = vmul.f32 -1.442695, %v2665_v38  ;;  %v1652_v5 = vmul.f32 -1.442695, %v2675_v49 }
 0x17f   :  { %v2091_v53 = vpop.eup %2090  ;;  %v1000_v27 = vmul.f32 %v2089_v23, %v2545_v28  ;;  %2116 = vpow2.f32 %v1643_v25  ;;  %v2678_v28 = vadd.f32 %v576_v41, %v2356_v19  ;;  %v1043_v3 = vpack.c.bf16 %v999_v52, %v995_v40 }
 0x180   :  { %v2093_v39 = vpop.eup %2092  ;;  %v1002_v16 = vmul.f32 %v2091_v53, %v2548_v35  ;;  %2118 = vpow2.f32 %v1645_v12  ;;  %v1045_v35 = vpack.c.bf16 %v1001_v9, %v997_v44 }
 0x181   :  { %v2095_v17 = vpop.eup %2094  ;;  %2120 = vpow2.f32 %v1644_v13  ;;  %v1044_v36 = vpack.c.bf16 %v1000_v27, %v996_v54  ;;  %v1654_v15 = vmul.f32 -1.442695, %v2678_v28  ;;  %v1003_v13 = vmul.f32 %v2093_v39, %v2551_v57 }
 0x182   :  { %v2097_v45 = vpop.eup %2096  ;;  %2122 = vpow2.f32 %v1646_v30  ;;  %v1046_v42 = vpack.c.bf16 %v1002_v16, %v998_v10  ;;  %v1005_v59 = vmul.f32 %v2095_v17, %v2554_v51 }
 0x183   :  { %v2099_v55 = vpop.eup %2098  ;;  %2124 = vpow2.f32 %v1647_v31  ;;  %1386 = vmatprep.mubr.bf16.mxu0 %v1044_v36  ;;  %v1004_v25 = vmul.f32 %v2097_v45, %v2557_v1 }
 0x184   :  { %v2101_v29 = vpop.eup %2100  ;;  %2126 = vpow2.f32 %v1649_v46  ;;  %1483 = vmatprep.mubr.bf16.mxu1 %v1046_v42  ;;  %1387 = vmatmul.mubr.bf16.gmra.mxu0 %v1043_v3  ;;  %v1006_v30 = vmul.f32 %v2099_v55, %v2560_v24 }
 0x185   :  { %v2103_v18 = vpop.eup %2102  ;;  %2128 = vpow2.f32 %v1648_v62  ;;  %1484 = vmatmul.mubr.bf16.gmra.mxu1 %v1045_v35  ;;  %v1007_v61 = vmul.f32 %v2101_v29, %v2573_v8 }
 0x186   :  { %v2105_v19 = vpop.eup %2104  ;;  %2130 = vpow2.f32 %v1650_v50  ;;  %v1009_v12 = vmul.f32 %v2103_v18, %v2576_v20 }
 0x187   :  { %v2107_v4 = vpop.eup %2106  ;;  %v1008_v56 = vmul.f32 %v2105_v19, %v2586_v6  ;;  %2132 = vpow2.f32 %v1651_v26  ;;  %v1047_v6 = vpack.c.bf16 %v1007_v61, %v1003_v13 }
 0x188   :  { %v2109_v0 = vpop.eup %2108  ;;  %v1010_v31 = vmul.f32 %v2107_v4, %v2589_v21  ;;  %2134 = vpow2.f32 %v1653_v43  ;;  %v1049_v57 = vpack.c.bf16 %v1009_v12, %v1005_v59 }
 0x189   :  { %v2111_v8 = vpop.eup %2110  ;;  %v819_v46 = vadd.f32 1.0, %v2109_v0  ;;  %2136 = vpow2.f32 %v1652_v5  ;;  %v1048_v62 = vpack.c.bf16 %v1008_v56, %v1004_v25 }
 0x18a   :  { %v2113_v1 = vpop.eup %2112  ;;  %v821_v50 = vadd.f32 1.0, %v2111_v8  ;;  %2138 = vpow2.f32 %v1654_v15  ;;  %v1050_v20 = vpack.c.bf16 %v1010_v31, %v1006_v30 }
 0x18b   :  { %v2115_v23 = vpop.eup %2114  ;;  %2140 = vrcp.f32 %v819_v46  ;;  %v820_v52 = vadd.f32 1.0, %v2113_v1  ;;  %1394 = vmatprep.mubr.bf16.mxu0 %v1048_v62 }
 0x18c   :  { %v2117_v24 = vpop.eup %2116  ;;  %2142 = vrcp.f32 %v821_v50  ;;  %v822_v21 = vadd.f32 1.0, %v2115_v23  ;;  %1491 = vmatprep.mubr.bf16.mxu1 %v1050_v20  ;;  %1395 = vmatmul.mubr.bf16.gmra.mxu0 %v1047_v6 }
 0x18d   :  { %v2119_v2 = vpop.eup %2118  ;;  %2144 = vrcp.f32 %v820_v52  ;;  %v823_v51 = vadd.f32 1.0, %v2117_v24  ;;  %1492 = vmatmul.mubr.bf16.gmra.mxu1 %v1049_v57 }
 0x18e   :  { %v2121_v53 = vpop.eup %2120  ;;  %2146 = vrcp.f32 %v822_v21  ;;  %v825_v54 = vadd.f32 1.0, %v2119_v2 }
 0x18f   :  { %v2123_v9 = vpop.eup %2122  ;;  %2148 = vrcp.f32 %v823_v51  ;;  %v824_v27 = vadd.f32 1.0, %v2121_v53 }
 0x190   :  { %v2125_v41 = vpop.eup %2124  ;;  %2150 = vrcp.f32 %v825_v54  ;;  %v826_v39 = vadd.f32 1.0, %v2123_v9 }
 0x191   :  { %v2127_v40 = vpop.eup %2126  ;;  %2152 = vrcp.f32 %v824_v27  ;;  %v827_v10 = vadd.f32 1.0, %v2125_v41 }
 0x192   :  { %v2129_v16 = vpop.eup %2128  ;;  %2154 = vrcp.f32 %v826_v39  ;;  %v829_v17 = vadd.f32 1.0, %v2127_v40 }
 0x193   :  { %v2131_v44 = vpop.eup %2130  ;;  %2156 = vrcp.f32 %v827_v10  ;;  %v828_v36 = vadd.f32 1.0, %v2129_v16 }
 0x194   :  { %v2133_v45 = vpop.eup %2132  ;;  %2158 = vrcp.f32 %v829_v17  ;;  %v830_v42 = vadd.f32 1.0, %v2131_v44 }
 0x195   :  { %v2135_v3 = vpop.eup %2134  ;;  %2160 = vrcp.f32 %v828_v36  ;;  %v831_v55 = vadd.f32 1.0, %v2133_v45 }
 0x196   :  { %v2137_v26 = vpop.eup %2136  ;;  %2162 = vrcp.f32 %v830_v42  ;;  %v833_v35 = vadd.f32 1.0, %v2135_v3 }
 0x197   :  { %v2139_v29 = vpop.eup %2138  ;;  %2164 = vrcp.f32 %v831_v55  ;;  %v832_v43 = vadd.f32 1.0, %v2137_v26 }
 0x198   :  { %v2141_v18 = vpop.eup %2140  ;;  %2166 = vrcp.f32 %v833_v35  ;;  %v834_v5 = vadd.f32 1.0, %v2139_v29 }
 0x199   :  { %v2143_v19 = vpop.eup %2142  ;;  %2168 = vrcp.f32 %v832_v43  ;;  %v1011_v59 = vmul.f32 %v2141_v18, %v2611_v63 }
 0x19a   :  { %v2145_v61 = vpop.eup %2144  ;;  %2170 = vrcp.f32 %v834_v5  ;;  %v1013_v50 = vmul.f32 %v2143_v19, %v2615_v58 }
 0x19b   :  { %v2147_v15 = vpop.eup %2146  ;;  %v1012_v13 = vmul.f32 %v2145_v61, %v2618_v11 }
 0x19c   :  { %v2149_v4 = vpop.eup %2148  ;;  %v1014_v46 = vmul.f32 %v2147_v15, %v2624_v22 }
 0x19d   :  { %v2151_v25 = vpop.eup %2150  ;;  %v1015_v56 = vmul.f32 %v2149_v4, %v2627_v47 }
 0x19e   :  { %v2153_v12 = vpop.eup %2152  ;;  %v1017_v30 = vmul.f32 %v2151_v25, %v2630_v14 }
 0x19f   :  { %v2155_v0 = vpop.eup %2154  ;;  %v1016_v31 = vmul.f32 %v2153_v12, %v2634_v33  ;;  %v1051_v23 = vpack.c.bf16 %v1015_v56, %v1011_v59 }
 0x1a0   :  { %v2157_v8 = vpop.eup %2156  ;;  %v1018_v62 = vmul.f32 %v2155_v0, %v2637_v7  ;;  %v1053_v11 = vpack.c.bf16 %v1017_v30, %v1013_v50 }
 0x1a1   :  { %v2159_v1 = vpop.eup %2158  ;;  %v1052_v20 = vpack.c.bf16 %v1016_v31, %v1012_v13  ;;  %v1019_v21 = vmul.f32 %v2157_v8, %v2640_v60  ;;  %v2711_v60 = vld [vmem:[%s2736_s4] ss:$0 sm:$0xff]  ;;  %s2289_s4 = smov [#allocation10]  }
 0x1a2   :  { %v2161_v6 = vpop.eup %2160  ;;  %v1054_v47 = vpack.c.bf16 %v1018_v62, %v1014_v46  ;;  %v1021_v53 = vmul.f32 %v2159_v1, %v2643_v32  ;;  %s1537_s15 = sshll.u32 %s2289_s4, 4  ;;  %s1538_s15 = int_to_ptr.vmem [resolvable:$true] %s1537_s15 }
 0x1a3   :  { %v2163_v52 = vpop.eup %2162  ;;  %1402 = vmatprep.mubr.bf16.mxu0 %v1052_v20  ;;  %v1020_v7 = vmul.f32 %v2161_v6, %v2646_v37  ;;  %s2252_s16 = scalar_lea.vmem %s1538_s15, 2048  ;;  %p2257_p7 = scmp.lt.s32.totalorder %s1538_s15, %s1538_s15 }
 0x1a4   :  { %v2165_v14 = vpop.eup %2164  ;;  %1499 = vmatprep.mubr.bf16.mxu1 %v1054_v47  ;;  %1403 = vmatmul.mubr.bf16.gmra.mxu0 %v1051_v23  ;;  %v1022_v2 = vmul.f32 %v2163_v52, %v2649_v34  ;;  %p2253_p6 = scmp.ne.s32.totalorder %s1538_s15, %s2252_s16  ;;  %p2258_p8 = scmp.lt.s32.totalorder %s2252_s16, %s2252_s16 }
 0x1a5   :  { %v2167_v33 = vpop.eup %2166  ;;  %1500 = vmatmul.mubr.bf16.gmra.mxu1 %v1053_v11  ;;  %v1023_v22 = vmul.f32 %v2165_v14, %v2662_v48 }
 0x1a6   :  { %v2169_v63 = vpop.eup %2168  ;;  %v1025_v58 = vmul.f32 %v2167_v33, %v2665_v38  ;;  %p2259_p9 = por %p2258_p8, %p2257_p7 }
 0x1a7   :  { %v2171_v57 = vpop.eup %2170  ;;  %v1024_v24 = vmul.f32 %v2169_v63, %v2675_v49  ;;  %v1055_v27 = vpack.c.bf16 %v1023_v22, %v1019_v21 }
 0x1a8   :  { %v1026_v51 = vmul.f32 %v2171_v57, %v2678_v28  ;;  %v1057_v48 = vpack.c.bf16 %v1025_v58, %v1021_v53  ;;  %p2260_p10 = pnand %p2259_p9, %p2253_p6 }
 0x1a9   :  { %v1056_v54 = vpack.c.bf16 %v1024_v24, %v1020_v7 }
 0x1aa   :  { %v1058_v9 = vpack.c.bf16 %v1026_v51, %v1022_v2 }
 0x1ab   :  { %1410 = vmatprep.mubr.bf16.mxu0 %v1056_v54 }
 0x1ac   :  { %1507 = vmatprep.mubr.bf16.mxu1 %v1058_v9  ;;  %1411 = vmatmul.mubr.bf16.gmra.mxu0 %v1055_v27 }
 0x1ad   :  { %1508 = vmatmul.mubr.bf16.gmra.mxu1 %v1057_v48 }
 0x205   :  { %v1768_v38 = vpop.f32.mrf.mxu1 }
 0x206   :  { %v1704_v37 = vpop.f32.mrf.mxu0 }
 0x207   :  { %v1769_v49 = vpop.f32.mrf.mxu1 }
 0x208   :  { %v1705_v34 = vpop.f32.mrf.mxu0  ;;  %v1770_v40 = vadd.f32 %v1769_v49, %v1768_v38 }
 0x209   :  { %v1706_v28 = vadd.f32 %v1705_v34, %v1704_v37  ;;  %v1771_v32 = vpop.f32.mrf.mxu1 }
 0x20a   :  { %v1707_v41 = vpop.f32.mrf.mxu0 }
 0x20b   :  { %v1357_v39 = vadd.f32 %v1706_v28, %v2711_v60  ;;  %v1772_v16 = vpop.f32.mrf.mxu1 }
 0x20c   :  { %v1708_v10 = vpop.f32.mrf.mxu0  ;;  %v1773_v45 = vadd.f32 %v1772_v16, %v1771_v32 }
 0x20d   :  { %v1454_v17 = vadd.f32 %v1770_v40, %v1357_v39  ;;  %v1709_v44 = vadd.f32 %v1708_v10, %v1707_v41 }
 0x20e   :  { %v1710_v3 = vpop.f32.mrf.mxu0  ;;  %v1774_v55 = vpop.f32.mrf.mxu1 }
 0x20f   :  { %1516 = vst [vmem:[#allocation10] sm:$0xff] %v1454_v17  ;;  %v1360_v36 = vadd.f32 %v1709_v44, %v2711_v60 }
 0x210   :  { %v1711_v26 = vpop.f32.mrf.mxu0  ;;  %v1775_v35 = vpop.f32.mrf.mxu1 }
 0x211   :  { %v1457_v42 = vadd.f32 %v1773_v45, %v1360_v36  ;;  %v1712_v29 = vadd.f32 %v1711_v26, %v1710_v3  ;;  %v1776_v19 = vadd.f32 %v1775_v35, %v1774_v55 }
 0x212   :  { %v1713_v43 = vpop.f32.mrf.mxu0  ;;  %v1777_v18 = vpop.f32.mrf.mxu1 }
 0x213   :  { %1517 = vst [vmem:[#allocation10 + $0x8] sm:$0xff] %v1457_v42  ;;  %v1365_v5 = vadd.f32 %v1712_v29, %v2711_v60 }
 0x214   :  { %v1714_v61 = vpop.f32.mrf.mxu0  ;;  %v1778_v15 = vpop.f32.mrf.mxu1 }
 0x215   :  { %v1462_v4 = vadd.f32 %v1776_v19, %v1365_v5  ;;  %v1715_v25 = vadd.f32 %v1714_v61, %v1713_v43  ;;  %v1779_v56 = vadd.f32 %v1778_v15, %v1777_v18 }
 0x217   :  { %1518 = vst [vmem:[#allocation10 + $0x10] sm:$0xff] %v1462_v4  ;;  %v1368_v12 = vadd.f32 %v1715_v25, %v2711_v60 }
 0x219   :  { %v1465_v0 = vadd.f32 %v1779_v56, %v1368_v12 }
 0x21b   :  { %1519 = vst [vmem:[#allocation10 + $0x18] sm:$0xff] %v1465_v0 }
 0x224   :  { %v1716_v13 = vpop.f32.mrf.mxu0 }
 0x225   :  { %v1780_v30 = vpop.f32.mrf.mxu1 }
 0x226   :  { %v1717_v31 = vpop.f32.mrf.mxu0 }
 0x227   :  { %v1718_v8 = vadd.f32 %v1717_v31, %v1716_v13  ;;  %v1781_v59 = vpop.f32.mrf.mxu1 }
 0x228   :  { %v1719_v46 = vpop.f32.mrf.mxu0  ;;  %v1782_v1 = vadd.f32 %v1781_v59, %v1780_v30 }
 0x229   :  { %v1373_v62 = vadd.f32 %v1718_v8, %v2711_v60  ;;  %v1783_v50 = vpop.f32.mrf.mxu1 }
 0x22a   :  { %v1720_v20 = vpop.f32.mrf.mxu0 }
 0x22b   :  { %v1470_v6 = vadd.f32 %v1782_v1, %v1373_v62  ;;  %v1721_v47 = vadd.f32 %v1720_v20, %v1719_v46  ;;  %v1784_v23 = vpop.f32.mrf.mxu1 }
 0x22c   :  { %v1722_v52 = vpop.f32.mrf.mxu0  ;;  %v1785_v14 = vadd.f32 %v1784_v23, %v1783_v50 }
 0x22d   :  { %1520 = vst [vmem:[#allocation10 + $0x20] sm:$0xff] %v1470_v6  ;;  %v1376_v11 = vadd.f32 %v1721_v47, %v2711_v60  ;;  %v1786_v33 = vpop.f32.mrf.mxu1 }
 0x22e   :  { %v1723_v63 = vpop.f32.mrf.mxu0 }
 0x22f   :  { %v1473_v22 = vadd.f32 %v1785_v14, %v1376_v11  ;;  %v1724_v57 = vadd.f32 %v1723_v63, %v1722_v52  ;;  %v1787_v7 = vpop.f32.mrf.mxu1 }
 0x230   :  { %v1725_v58 = vpop.f32.mrf.mxu0  ;;  %v1788_v21 = vadd.f32 %v1787_v7, %v1786_v33 }
 0x231   :  { %1521 = vst [vmem:[#allocation10 + $0x28] sm:$0xff] %v1473_v22  ;;  %v1381_v24 = vadd.f32 %v1724_v57, %v2711_v60  ;;  %v1789_v2 = vpop.f32.mrf.mxu1 }
 0x232   :  { %v1726_v51 = vpop.f32.mrf.mxu0 }
 0x233   :  { %v1478_v53 = vadd.f32 %v1788_v21, %v1381_v24  ;;  %v1727_v54 = vadd.f32 %v1726_v51, %v1725_v58  ;;  %v1790_v9 = vpop.f32.mrf.mxu1 }
 0x234   :  { %v1791_v48 = vadd.f32 %v1790_v9, %v1789_v2 }
 0x235   :  { %1522 = vst [vmem:[#allocation10 + $0x30] sm:$0xff] %v1478_v53  ;;  %v1384_v27 = vadd.f32 %v1727_v54, %v2711_v60 }
 0x237   :  { %v1481_v37 = vadd.f32 %v1791_v48, %v1384_v27 }
 0x239   :  { %1523 = vst [vmem:[#allocation10 + $0x38] sm:$0xff] %v1481_v37 }
 0x244   :  { %v1728_v38 = vpop.f32.mrf.mxu0 }
 0x245   :  { %v1792_v34 = vpop.f32.mrf.mxu1 }
 0x246   :  { %v1729_v49 = vpop.f32.mrf.mxu0 }
 0x247   :  { %v1730_v28 = vadd.f32 %v1729_v49, %v1728_v38  ;;  %v1793_v41 = vpop.f32.mrf.mxu1 }
 0x248   :  { %v1731_v32 = vpop.f32.mrf.mxu0  ;;  %v1794_v40 = vadd.f32 %v1793_v41, %v1792_v34 }
 0x249   :  { %v1389_v39 = vadd.f32 %v1730_v28, %v2711_v60  ;;  %v1795_v10 = vpop.f32.mrf.mxu1 }
 0x24a   :  { %v1732_v16 = vpop.f32.mrf.mxu0 }
 0x24b   :  { %v1486_v17 = vadd.f32 %v1794_v40, %v1389_v39  ;;  %v1733_v44 = vadd.f32 %v1732_v16, %v1731_v32  ;;  %v1796_v36 = vpop.f32.mrf.mxu1 }
 0x24c   :  { %v1734_v45 = vpop.f32.mrf.mxu0  ;;  %v1797_v3 = vadd.f32 %v1796_v36, %v1795_v10 }
 0x24d   :  { %1524 = vst [vmem:[#allocation10 + $0x40] sm:$0xff] %v1486_v17  ;;  %v1392_v42 = vadd.f32 %v1733_v44, %v2711_v60  ;;  %v1798_v55 = vpop.f32.mrf.mxu1 }
 0x24e   :  { %v1735_v26 = vpop.f32.mrf.mxu0 }
 0x24f   :  { %v1489_v35 = vadd.f32 %v1797_v3, %v1392_v42  ;;  %v1736_v29 = vadd.f32 %v1735_v26, %v1734_v45  ;;  %v1799_v43 = vpop.f32.mrf.mxu1 }
 0x250   :  { %v1737_v18 = vpop.f32.mrf.mxu0  ;;  %v1800_v19 = vadd.f32 %v1799_v43, %v1798_v55 }
 0x251   :  { %1525 = vst [vmem:[#allocation10 + $0x48] sm:$0xff] %v1489_v35  ;;  %v1397_v5 = vadd.f32 %v1736_v29, %v2711_v60  ;;  %v1801_v61 = vpop.f32.mrf.mxu1 }
 0x252   :  { %v1738_v15 = vpop.f32.mrf.mxu0 }
 0x253   :  { %v1494_v4 = vadd.f32 %v1800_v19, %v1397_v5  ;;  %v1739_v25 = vadd.f32 %v1738_v15, %v1737_v18  ;;  %v1802_v12 = vpop.f32.mrf.mxu1 }
 0x254   :  { %v1803_v0 = vadd.f32 %v1802_v12, %v1801_v61 }
 0x255   :  { %1526 = vst [vmem:[#allocation10 + $0x50] sm:$0xff] %v1494_v4  ;;  %v1400_v56 = vadd.f32 %v1739_v25, %v2711_v60 }
 0x257   :  { %v1497_v13 = vadd.f32 %v1803_v0, %v1400_v56 }
 0x259   :  { %1527 = vst [vmem:[#allocation10 + $0x58] sm:$0xff] %v1497_v13 }
 0x264   :  { %v1740_v30 = vpop.f32.mrf.mxu0 }
 0x265   :  { %v1804_v31 = vpop.f32.mrf.mxu1 }
 0x266   :  { %v1741_v8 = vpop.f32.mrf.mxu0 }
 0x267   :  { %v1742_v59 = vadd.f32 %v1741_v8, %v1740_v30  ;;  %v1805_v46 = vpop.f32.mrf.mxu1 }
 0x268   :  { %v1743_v62 = vpop.f32.mrf.mxu0  ;;  %v1806_v50 = vadd.f32 %v1805_v46, %v1804_v31 }
 0x269   :  { %v1405_v1 = vadd.f32 %v1742_v59, %v2711_v60  ;;  %v1807_v20 = vpop.f32.mrf.mxu1 }
 0x26a   :  { %v1744_v6 = vpop.f32.mrf.mxu0 }
 0x26b   :  { %v1502_v47 = vadd.f32 %v1806_v50, %v1405_v1  ;;  %v1745_v23 = vadd.f32 %v1744_v6, %v1743_v62  ;;  %v1808_v52 = vpop.f32.mrf.mxu1 }
 0x26c   :  { %v1746_v11 = vpop.f32.mrf.mxu0  ;;  %v1809_v33 = vadd.f32 %v1808_v52, %v1807_v20 }
 0x26d   :  { %1528 = vst [vmem:[#allocation10 + $0x60] sm:$0xff] %v1502_v47  ;;  %v1408_v14 = vadd.f32 %v1745_v23, %v2711_v60  ;;  %v1810_v63 = vpop.f32.mrf.mxu1 }
 0x26e   :  { %v1747_v22 = vpop.f32.mrf.mxu0 }
 0x26f   :  { %v1505_v57 = vadd.f32 %v1809_v33, %v1408_v14  ;;  %v1748_v7 = vadd.f32 %v1747_v22, %v1746_v11  ;;  %v1811_v58 = vpop.f32.mrf.mxu1 }
 0x270   :  { %v1749_v24 = vpop.f32.mrf.mxu0  ;;  %v1812_v2 = vadd.f32 %v1811_v58, %v1810_v63 }
 0x271   :  { %1529 = vst [vmem:[#allocation10 + $0x68] sm:$0xff] %v1505_v57  ;;  %v1413_v21 = vadd.f32 %v1748_v7, %v2711_v60  ;;  %v1813_v51 = vpop.f32.mrf.mxu1 }
 0x272   :  { %v1750_v53 = vpop.f32.mrf.mxu0 }
 0x273   :  { %v1510_v54 = vadd.f32 %v1812_v2, %v1413_v21  ;;  %v1751_v9 = vadd.f32 %v1750_v53, %v1749_v24  ;;  %v1814_v27 = vpop.f32.mrf.mxu1 }
 0x274   :  { %v1815_v37 = vadd.f32 %v1814_v27, %v1813_v51 }
 0x275   :  { %1530 = vst [vmem:[#allocation10 + $0x70] sm:$0xff] %v1510_v54  ;;  %v1416_v48 = vadd.f32 %v1751_v9, %v2711_v60 }
 0x277   :  { %v1513_v38 = vadd.f32 %v1815_v37, %v1416_v48 }
 0x279   :  { %1531 = vst [vmem:[#allocation10 + $0x78] sm:$0xff] %v1513_v38 }
 0x27a   :  { %2263 = shalt.err (!%p2260_p10)
}
 0x27b   :  { %s2290_s17 = smov 128   ;;  %s2291_s18 = smov 8  }
 0x27c   :  { %1543 = dma.vmem_to_hbm [thread:$0]  %s1538_s15, 2048, %s2737_s5, [#allocation4], %s2290_s17, %s2290_s17, %s2291_s18  }
 0x27d   :  { %2278 = dma.done.wait [#allocation4], 2048  }
 0x27e   :  { %2279 = vsyncadd [#allocation4], 4294965248 }
 0x27f   :  { %1547 = vsyncpa [#allocation3], 1 }
 0x280   :  { %1548 = vsyncpa [#allocation6], 1 }
 0x281   :  { %1549 = vsyncpa [#allocation9], 1 }
 0x282   :  { %1550 = vsyncpa [#allocation4], 1 }

// kernel: tpu_custom_call.1
= control target key start
LH: loop header
LB: loop body
LE: loop exit
PB: predicated region body
PF: predicated region fallthrough
CT: control target
= control target key end

     0   :  { %10 = vsyncpa [#allocation3], 0  ;;  %s2732_s0 = inlined_call_operand.hbm [shape: bf16[128,128], index: 0, kind: input, shape index: {}]   ;;  %s2733_s1 = inlined_call_operand.hbm [shape: bf16[128,512], index: 1, kind: input, shape index: {}]   ;;  %s2734_s2 = inlined_call_operand.hbm [shape: f32[1,512], index: 2, kind: input, shape index: {}]   ;;  %s2735_s3 = inlined_call_operand.hbm [shape: bf16[512,128], index: 3, kind: input, shape index: {}]   ;;  %s2736_s4 = inlined_call_operand.vmem [shape: f32[1,128], index: 4, kind: input, shape index: {}]   ;;  %s2737_s5 = inlined_call_operand.hbm [shape: f32[128,128], index: 5, kind: output, shape index: {}]  }
   0x1   :  { %11 = vsyncpa [#allocation6], 0 }
   0x2   :  { %12 = vsyncpa [#allocation9], 0 }
   0x3   :  { %13 = vsyncpa [#allocation4], 0  ;;  %s2280_s18 = smov [#allocation5]  }
   0x4   :  { %s31_s19 = sshll.u32 %s2280_s18, 4  ;;  %s32_s19 = int_to_ptr.vmem [resolvable:$true] %s31_s19 }
   0x5   :  { %s2180_s20 = scalar_lea.vmem %s32_s19, 4096  ;;  %p2185_p1 = scmp.lt.s32.totalorder %s32_s19, %s32_s19 }
   0x6   :  { %p2181_p0 = scmp.ne.s32.totalorder %s32_s19, %s2180_s20  ;;  %p2186_p2 = scmp.lt.s32.totalorder %s2180_s20, %s2180_s20 }
   0x8   :  { %p2187_p3 = por %p2186_p2, %p2185_p1 }
   0xa   :  { %p2188_p4 = pnand %p2187_p3, %p2181_p0 }
   0xc   :  { %2191 = shalt.err (!%p2188_p4)
}
   0xd   :  { %s2281_s21 = smov 256   ;;  %s2282_s22 = smov 16  }
   0xe   :  { %37 = dma.hbm_to_vmem [thread:$0]  %s2733_s1, 4096, %s32_s19, [#allocation6], %s2281_s21, %s2281_s21, %s2282_s22  }
   0xf   :  { %s2283_s25 = smov [#allocation2]  }
  0x10   :  { %s19_s26 = sshll.u32 %s2283_s25, 4  ;;  %s20_s26 = int_to_ptr.vmem [resolvable:$true] %s19_s26 }
  0x11   :  { %s2200_s27 = scalar_lea.vmem %s20_s26, 1024  ;;  %p2205_p6 = scmp.lt.s32.totalorder %s20_s26, %s20_s26 }
  0x12   :  { %p2201_p5 = scmp.ne.s32.totalorder %s20_s26, %s2200_s27  ;;  %p2206_p7 = scmp.lt.s32.totalorder %s2200_s27, %s2200_s27 }
  0x14   :  { %p2207_p8 = por %p2206_p7, %p2205_p6 }
  0x16   :  { %p2208_p9 = pnand %p2207_p8, %p2201_p5 }
  0x18   :  { %2211 = shalt.err (!%p2208_p9)
}
  0x19   :  { %s2284_s28 = smov 64   ;;  %s2285_s29 = smov 4  }
  0x1a   :  { %25 = dma.hbm_to_vmem [thread:$0]  %s2732_s0, 1024, %s20_s26, [#allocation3], %s2284_s28, %s2284_s28, %s2285_s29  }
  0x1b   :  { %s2286_s7 = smov [#allocation7]   ;;  %s2287_s9 = smov [#allocation8]  }
  0x1c   :  { %s44_s8 = sshll.u32 %s2286_s7, 4  ;;  %s53_s1 = sshll.u32 %s2287_s9, 4  ;;  %s45_s8 = int_to_ptr.vmem [resolvable:$true] %s44_s8  ;;  %s54_s1 = int_to_ptr.vmem [resolvable:$true] %s53_s1 }
  0x1d   :  { %s2220_s10 = scalar_lea.vmem %s45_s8, 64  ;;  %p2225_p11 = scmp.lt.s32.totalorder %s45_s8, %s45_s8 }
  0x1e   :  { %p2221_p10 = scmp.ne.s32.totalorder %s45_s8, %s2220_s10  ;;  %p2226_p12 = scmp.lt.s32.totalorder %s2220_s10, %s2220_s10 }
  0x20   :  { %p2227_p13 = por %p2226_p12, %p2225_p11 }
  0x22   :  { %p2228_p0 = pnand %p2227_p13, %p2221_p10 }
  0x24   :  { %2231 = shalt.err (!%p2228_p0)
}
  0x25   :  { %47 = dma.hbm_to_vmem [thread:$0]  %s2734_s2, 64, %s45_s8, [#allocation6]  }
  0x26   :  { %s2240_s13 = scalar_lea.vmem %s54_s1, 4096  ;;  %p2245_p2 = scmp.lt.s32.totalorder %s54_s1, %s54_s1 }
  0x27   :  { %p2241_p1 = scmp.ne.s32.totalorder %s54_s1, %s2240_s13  ;;  %p2246_p3 = scmp.lt.s32.totalorder %s2240_s13, %s2240_s13 }
  0x29   :  { %p2247_p4 = por %p2246_p3, %p2245_p2 }
  0x2b   :  { %p2248_p5 = pnand %p2247_p4, %p2241_p1 }
  0x2d   :  { %2251 = shalt.err (!%p2248_p5)
}
  0x2e   :  { %59 = dma.hbm_to_vmem [thread:$0]  %s2735_s3, 4096, %s54_s1, [#allocation9], %s2284_s28, %s2284_s28, %s2285_s29  }
  0x2f   :  { %2272 = dma.done.wait [#allocation3], 1024  }
  0x30   :  { %2273 = vsyncadd [#allocation3], 4294966272 }
  0x31   :  { %2274 = dma.done.wait [#allocation6], 4160  }
  0x32   :  { %2275 = vsyncadd [#allocation6], 4294963136 }
  0x33   :  { %2276 = dma.done.wait [#allocation9], 4096  }
  0x34   :  { %2277 = vsyncadd [#allocation9], 4294963200  ;;  %v2288_v0 = vmov 0   ;;  %v1828_v1 = vld [vmem:[#allocation5 + $0xe4] ss:$16 sps:$4 sm:$0xff]   ;;  %v1884_v34 = vld [vmem:[#allocation8 + $0x78] sm:$0xff]  }
  0x35   :  { %385 = vmatprep.mubr.bf16.mxu0 %v2288_v0  ;;  %498 = vmatprep.mubr.bf16.mxu1 %v2288_v0  ;;  %v1830_v2 = vld [vmem:[#allocation5 + $0xec] ss:$16 sps:$4 sm:$0xff]   ;;  %v1832_v3 = vld [vmem:[#allocation5 + $0xe0] ss:$16 sps:$4 sm:$0xff]   ;;  %v1833_v4 = vld [vmem:[#allocation5 + $0xe8] ss:$16 sps:$4 sm:$0xff]  }
  0x36   :  { %353 = vmatprep.subr.bf16.mxu0 %v1828_v1  ;;  %466 = vmatprep.subr.bf16.mxu1 %v1830_v2  ;;  %v1834_v5 = vld [vmem:[#allocation5 + $0xc4] ss:$16 sps:$4 sm:$0xff]   ;;  %v1836_v6 = vld [vmem:[#allocation5 + $0xcc] ss:$16 sps:$4 sm:$0xff]   ;;  %v1838_v7 = vld [vmem:[#allocation5 + $0xc0] ss:$16 sps:$4 sm:$0xff]  }
  0x37   :  { %354 = vmatpush1.bf16.msra.mxu0 %v1832_v3  ;;  %467 = vmatpush1.bf16.msra.mxu1 %v1833_v4  ;;  %v1839_v8 = vld [vmem:[#allocation5 + $0xc8] ss:$16 sps:$4 sm:$0xff]   ;;  %v1840_v9 = vld [vmem:[#allocation5 + $0xa4] ss:$16 sps:$4 sm:$0xff]   ;;  %v1842_v10 = vld [vmem:[#allocation5 + $0xac] ss:$16 sps:$4 sm:$0xff]  }
  0x38   :  { %355 = vmatprep.subr.bf16.mxu0 %v1834_v5  ;;  %468 = vmatprep.subr.bf16.mxu1 %v1836_v6  ;;  %v1844_v11 = vld [vmem:[#allocation5 + $0xa0] ss:$16 sps:$4 sm:$0xff]   ;;  %v1845_v12 = vld [vmem:[#allocation5 + $0xa8] ss:$16 sps:$4 sm:$0xff]   ;;  %v1846_v13 = vld [vmem:[#allocation5 + $0x84] ss:$16 sps:$4 sm:$0xff]  }
  0x39   :  { %v1848_v14 = vld [vmem:[#allocation5 + $0x8c] ss:$16 sps:$4 sm:$0xff]   ;;  %v1850_v15 = vld [vmem:[#allocation5 + $0x80] ss:$16 sps:$4 sm:$0xff]   ;;  %v1851_v16 = vld [vmem:[#allocation5 + $0x88] ss:$16 sps:$4 sm:$0xff]  }
  0x3a   :  { %v1852_v17 = vld [vmem:[#allocation5 + $0x64] ss:$16 sps:$4 sm:$0xff]   ;;  %v1854_v18 = vld [vmem:[#allocation5 + $0x6c] ss:$16 sps:$4 sm:$0xff]   ;;  %v1856_v19 = vld [vmem:[#allocation5 + $0x60] ss:$16 sps:$4 sm:$0xff]  }
  0x3b   :  { %356 = vmatpush1.bf16.msra.mxu0 %v1838_v7  ;;  %469 = vmatpush1.bf16.msra.mxu1 %v1839_v8  ;;  %v1857_v20 = vld [vmem:[#allocation5 + $0x68] ss:$16 sps:$4 sm:$0xff]   ;;  %v1858_v21 = vld [vmem:[#allocation5 + $0x44] ss:$16 sps:$4 sm:$0xff]   ;;  %v1860_v22 = vld [vmem:[#allocation5 + $0x4c] ss:$16 sps:$4 sm:$0xff]  }
  0x3c   :  { %357 = vmatprep.subr.bf16.mxu0 %v1840_v9  ;;  %470 = vmatprep.subr.bf16.mxu1 %v1842_v10  ;;  %v1862_v23 = vld [vmem:[#allocation5 + $0x40] ss:$16 sps:$4 sm:$0xff]   ;;  %v1863_v24 = vld [vmem:[#allocation5 + $0x48] ss:$16 sps:$4 sm:$0xff]   ;;  %v1864_v25 = vld [vmem:[#allocation5 + $0x24] ss:$16 sps:$4 sm:$0xff]   ;;  %v125_v9 = vlaneseq }
  0x3d   :  { %v1866_v26 = vld [vmem:[#allocation5 + $0x2c] ss:$16 sps:$4 sm:$0xff]   ;;  %v1868_v27 = vld [vmem:[#allocation5 + $0x20] ss:$16 sps:$4 sm:$0xff]   ;;  %v1869_v28 = vld [vmem:[#allocation5 + $0x28] ss:$16 sps:$4 sm:$0xff]  }
  0x3e   :  { %v1870_v29 = vld [vmem:[#allocation5 + $0x4] ss:$16 sps:$4 sm:$0xff]   ;;  %v1872_v30 = vld [vmem:[#allocation5 + $0xc] ss:$16 sps:$4 sm:$0xff]   ;;  %v1874_v31 = vld [vmem:[#allocation5] ss:$16 sps:$4 sm:$0xff]  }
  0x3f   :  { %358 = vmatpush1.bf16.msra.mxu0 %v1844_v11  ;;  %471 = vmatpush1.bf16.msra.mxu1 %v1845_v12  ;;  %v1875_v32 = vld [vmem:[#allocation5 + $0x8] ss:$16 sps:$4 sm:$0xff]   ;;  %v1876_v33 = vld [vmem:[#allocation2] sm:$0xff]   ;;  %v1892_v42 = vld [vmem:[#allocation8 + $0x68] sm:$0xff]   ;;  %v126_v10 = vshrl.u32 %v125_v9, 7 }
  0x40   :  { %359 = vmatprep.subr.bf16.mxu0 %v1846_v13  ;;  %472 = vmatprep.subr.bf16.mxu1 %v1848_v14  ;;  %v1885_v35 = vld [vmem:[#allocation8 + $0x38] sm:$0xff]   ;;  %v1888_v38 = vld [vmem:[#allocation8 + $0x70] sm:$0xff]   ;;  %v1877_v43 = vld [vmem:[#allocation2 + $0x8] sm:$0xff]  }
  0x41   :  { %v1886_v36 = vld [vmem:[#allocation8 + $0xf8] sm:$0xff]   ;;  %v1889_v39 = vld [vmem:[#allocation8 + $0x30] sm:$0xff]   ;;  %v1893_v44 = vld [vmem:[#allocation8 + $0x28] sm:$0xff]   ;;  %v127_v11 = vsub.s32 0, %v126_v10  ;;  %v135_v12 = vsub.s32 2, %v126_v10  ;;  %v131_v14 = vsub.s32 1, %v126_v10 }
  0x42   :  { %v1887_v37 = vld [vmem:[#allocation8 + $0xb8] sm:$0xff]   ;;  %v1890_v40 = vld [vmem:[#allocation8 + $0xf0] sm:$0xff]   ;;  %v1894_v45 = vld [vmem:[#allocation8 + $0xe8] sm:$0xff]  }
  0x43   :  { %360 = vmatpush1.bf16.msra.mxu0 %v1850_v15  ;;  %473 = vmatpush1.bf16.msra.mxu1 %v1851_v16  ;;  %v1891_v41 = vld [vmem:[#allocation8 + $0xb0] sm:$0xff]   ;;  %v1880_v48 = vld [vmem:[#allocation2 + $0x20] sm:$0xff]   ;;  %v1881_v49 = vld [vmem:[#allocation2 + $0x28] sm:$0xff]   ;;  %v139_v15 = vsub.s32 3, %v126_v10 }
  0x44   :  { %361 = vmatprep.subr.bf16.mxu0 %v1852_v17  ;;  %474 = vmatprep.subr.bf16.mxu1 %v1854_v18  ;;  %v1878_v46 = vld [vmem:[#allocation2 + $0x10] sm:$0xff]   ;;  %v1879_v47 = vld [vmem:[#allocation2 + $0x18] sm:$0xff]   ;;  %v1896_v53 = vld [vmem:[#allocation8 + $0x60] sm:$0xff]  }
  0x45   :  { %v1882_v50 = vld [vmem:[#allocation2 + $0x30] sm:$0xff]   ;;  %v1883_v51 = vld [vmem:[#allocation2 + $0x38] sm:$0xff]   ;;  %v1898_v54 = vld [vmem:[#allocation8 + $0xe0] sm:$0xff]  }
  0x46   :  { %v1895_v52 = vld [vmem:[#allocation8 + $0xa8] sm:$0xff]   ;;  %v1897_v55 = vld [vmem:[#allocation8 + $0x20] sm:$0xff]   ;;  %v1900_v57 = vld [vmem:[#allocation8 + $0x58] sm:$0xff]  }
  0x47   :  { %362 = vmatpush1.bf16.msra.mxu0 %v1856_v19  ;;  %475 = vmatpush1.bf16.msra.mxu1 %v1857_v20  ;;  %v1899_v56 = vld [vmem:[#allocation8 + $0xa0] sm:$0xff]   ;;  %v1902_v58 = vld [vmem:[#allocation8 + $0xd8] sm:$0xff]   ;;  %v1904_v61 = vld [vmem:[#allocation8 + $0x50] sm:$0xff]  }
  0x48   :  { %363 = vmatprep.subr.bf16.mxu0 %v1858_v21  ;;  %476 = vmatprep.subr.bf16.mxu1 %v1860_v22  ;;  %v1901_v59 = vld [vmem:[#allocation8 + $0x18] sm:$0xff]   ;;  %v1906_v62 = vld [vmem:[#allocation8 + $0xd0] sm:$0xff]   ;;  %v1908_v1 = vld [vmem:[#allocation8 + $0x48] sm:$0xff]  }
  0x49   :  { %v1903_v60 = vld [vmem:[#allocation8 + $0x98] sm:$0xff]   ;;  %v1905_v63 = vld [vmem:[#allocation8 + $0x10] sm:$0xff]   ;;  %v1910_v2 = vld [vmem:[#allocation8 + $0xc8] sm:$0xff]  }
  0x4a   :  { %v1909_v3 = vld [vmem:[#allocation8 + $0x8] sm:$0xff]   ;;  %v1912_v5 = vld [vmem:[#allocation8 + $0x40] sm:$0xff]   ;;  %v123_v13 = vld [vmem:[#allocation7] sm:$0xf] }
  0x4b   :  { %364 = vmatpush1.bf16.msra.mxu0 %v1862_v23  ;;  %477 = vmatpush1.bf16.msra.mxu1 %v1863_v24  ;;  %v1911_v4 = vld [vmem:[#allocation8 + $0x88] sm:$0xff]   ;;  %v1914_v6 = vld [vmem:[#allocation8 + $0xc0] sm:$0xff]   ;;  %v2350_v16 = vrot.slane %v123_v13, %v127_v11  ;;  %v2352_v17 = vrot.slane %v123_v13, %v135_v12  ;;  %v2354_v18 = vrot.slane %v123_v13, %v131_v14 }
  0x4c   :  { %365 = vmatprep.subr.bf16.mxu0 %v1864_v25  ;;  %478 = vmatprep.subr.bf16.mxu1 %v1866_v26  ;;  %v1913_v7 = vld [vmem:[#allocation8] sm:$0xff]   ;;  %v2356_v19 = vrot.slane %v123_v13, %v139_v15 }
  0x4d   :  { %v1915_v8 = vld [vmem:[#allocation8 + $0x80] sm:$0xff]  }
  0x4f   :  { %366 = vmatpush1.bf16.msra.mxu0 %v1868_v27  ;;  %479 = vmatpush1.bf16.msra.mxu1 %v1869_v28 }
  0x50   :  { %367 = vmatprep.subr.bf16.mxu0 %v1870_v29  ;;  %480 = vmatprep.subr.bf16.mxu1 %v1872_v30 }
  0x53   :  { %368 = vmatpush1.bf16.msra.mxu0 %v1874_v31  ;;  %481 = vmatpush1.bf16.msra.mxu1 %v1875_v32 }
  0x54   :  { %1688 = vmatprep.subr.bf16.mxu0 %v1884_v34  ;;  %1752 = vmatprep.subr.bf16.mxu1 %v1886_v36 }
  0x56   :  { %386 = vmatmul.mubr.bf16.vlgmr.msra.gmra.mxu0 %v1876_v33  ;;  %499 = vmatmul.mubr.bf16.vlgmr.msra.gmra.mxu1 %v1876_v33 }
  0x57   :  { %395 = vmatprep.mubr.bf16.mxu0 %v2288_v0  ;;  %508 = vmatprep.mubr.bf16.mxu1 %v2288_v0 }
  0x58   :  { %1689 = vmatpush3.bf16.msra.mxu0 %v1885_v35  ;;  %1753 = vmatpush3.bf16.msra.mxu1 %v1887_v37 }
  0x59   :  { %1690 = vmatprep.subr.bf16.mxu0 %v1888_v38  ;;  %1754 = vmatprep.subr.bf16.mxu1 %v1890_v40 }
  0x5c   :  { %1691 = vmatpush3.bf16.msra.mxu0 %v1889_v39  ;;  %1755 = vmatpush3.bf16.msra.mxu1 %v1891_v41 }
  0x5d   :  { %1692 = vmatprep.subr.bf16.mxu0 %v1892_v42  ;;  %1756 = vmatprep.subr.bf16.mxu1 %v1894_v45 }
  0x5e   :  { %396 = vmatmul.mubr.bf16.gmra.mxu0 %v1877_v43  ;;  %509 = vmatmul.mubr.bf16.gmra.mxu1 %v1877_v43 }
  0x5f   :  { %405 = vmatprep.mubr.bf16.mxu0 %v2288_v0  ;;  %518 = vmatprep.mubr.bf16.mxu1 %v2288_v0 }
  0x60   :  { %1693 = vmatpush3.bf16.msra.mxu0 %v1893_v44  ;;  %1757 = vmatpush3.bf16.msra.mxu1 %v1895_v52 }
  0x61   :  { %1694 = vmatprep.subr.bf16.mxu0 %v1896_v53  ;;  %1758 = vmatprep.subr.bf16.mxu1 %v1898_v54 }
  0x64   :  { %1695 = vmatpush3.bf16.msra.mxu0 %v1897_v55  ;;  %1759 = vmatpush3.bf16.msra.mxu1 %v1899_v56 }
  0x65   :  { %1696 = vmatprep.subr.bf16.mxu0 %v1900_v57  ;;  %1760 = vmatprep.subr.bf16.mxu1 %v1902_v58 }
  0x66   :  { %406 = vmatmul.mubr.bf16.gmra.mxu0 %v1878_v46  ;;  %519 = vmatmul.mubr.bf16.gmra.mxu1 %v1878_v46 }
  0x67   :  { %415 = vmatprep.mubr.bf16.mxu0 %v2288_v0  ;;  %528 = vmatprep.mubr.bf16.mxu1 %v2288_v0 }
  0x68   :  { %1697 = vmatpush3.bf16.msra.mxu0 %v1901_v59  ;;  %1761 = vmatpush3.bf16.msra.mxu1 %v1903_v60 }
  0x69   :  { %1698 = vmatprep.subr.bf16.mxu0 %v1904_v61  ;;  %1762 = vmatprep.subr.bf16.mxu1 %v1906_v62 }
  0x6c   :  { %1699 = vmatpush3.bf16.msra.mxu0 %v1905_v63 }
  0x6d   :  { %1700 = vmatprep.subr.bf16.mxu0 %v1908_v1 }
  0x6e   :  { %416 = vmatmul.mubr.bf16.gmra.mxu0 %v1879_v47  ;;  %529 = vmatmul.mubr.bf16.gmra.mxu1 %v1879_v47 }
  0x6f   :  { %425 = vmatprep.mubr.bf16.mxu0 %v2288_v0  ;;  %538 = vmatprep.mubr.bf16.mxu1 %v2288_v0 }
  0x70   :  { %1701 = vmatpush3.bf16.msra.mxu0 %v1909_v3 }
  0x71   :  { %1702 = vmatprep.subr.bf16.mxu0 %v1912_v5 }
  0x74   :  { %1703 = vmatpush3.bf16.msra.mxu0 %v1913_v7 }
  0x76   :  { %426 = vmatmul.mubr.bf16.gmra.mxu0 %v1880_v48  ;;  %539 = vmatmul.mubr.bf16.gmra.mxu1 %v1880_v48 }
  0x77   :  { %435 = vmatprep.mubr.bf16.mxu0 %v2288_v0  ;;  %548 = vmatprep.mubr.bf16.mxu1 %v2288_v0 }
  0x7e   :  { %436 = vmatmul.mubr.bf16.gmra.mxu0 %v1881_v49  ;;  %549 = vmatmul.mubr.bf16.gmra.mxu1 %v1881_v49 }
  0x7f   :  { %445 = vmatprep.mubr.bf16.mxu0 %v2288_v0  ;;  %558 = vmatprep.mubr.bf16.mxu1 %v2288_v0 }
  0x86   :  { %446 = vmatmul.mubr.bf16.gmra.mxu0 %v1882_v50  ;;  %559 = vmatmul.mubr.bf16.gmra.mxu1 %v1882_v50 }
  0x87   :  { %455 = vmatprep.mubr.bf16.mxu0 %v2288_v0  ;;  %568 = vmatprep.mubr.bf16.mxu1 %v2288_v0  ;;  %v1907_v0 = vld [vmem:[#allocation8 + $0x90] sm:$0xff]  }
  0x88   :  { %1763 = vmatpush3.bf16.msra.mxu1 %v1907_v0 }
  0x89   :  { %1764 = vmatprep.subr.bf16.mxu1 %v1910_v2 }
  0x8c   :  { %1765 = vmatpush3.bf16.msra.mxu1 %v1911_v4 }
  0x8d   :  { %1766 = vmatprep.subr.bf16.mxu1 %v1914_v6 }
  0x8e   :  { %456 = vmatmul.mubr.bf16.gmra.mxu0 %v1883_v51  ;;  %569 = vmatmul.mubr.bf16.gmra.mxu1 %v1883_v51 }
  0x90   :  { %1767 = vmatpush3.bf16.msra.mxu1 %v1915_v8 }
 0x116   :  { %v387_v20 = vpop.f32.mrf.mxu0  ;;  %v500_v21 = vpop.f32.mrf.mxu1 }
 0x117   :  { %v2359_v22 = vadd.f32 %v387_v20, %v2350_v16  ;;  %v2362_v23 = vadd.f32 %v500_v21, %v2352_v17 }
 0x118   :  { %v389_v24 = vpop.f32.mrf.mxu0  ;;  %v502_v25 = vpop.f32.mrf.mxu1 }
 0x119   :  { %v1591_v26 = vmul.f32 -1.442695, %v2359_v22  ;;  %v1593_v27 = vmul.f32 -1.442695, %v2362_v23  ;;  %v2367_v28 = vadd.f32 %v389_v24, %v2354_v18  ;;  %v2370_v29 = vadd.f32 %v502_v25, %v2356_v19 }
 0x11a   :  { %v391_v30 = vpop.f32.mrf.mxu0  ;;  %v504_v31 = vpop.f32.mrf.mxu1 }
 0x11b   :  { %1916 = vpow2.f32 %v1591_v26  ;;  %v1592_v32 = vmul.f32 -1.442695, %v2367_v28  ;;  %v1594_v33 = vmul.f32 -1.442695, %v2370_v29  ;;  %v2375_v34 = vadd.f32 %v391_v30, %v2350_v16 }
 0x11c   :  { %1918 = vpow2.f32 %v1593_v27  ;;  %v2378_v35 = vadd.f32 %v504_v31, %v2352_v17  ;;  %v393_v36 = vpop.f32.mrf.mxu0  ;;  %v506_v37 = vpop.f32.mrf.mxu1 }
 0x11d   :  { %1920 = vpow2.f32 %v1592_v32  ;;  %v1595_v38 = vmul.f32 -1.442695, %v2375_v34  ;;  %v2382_v39 = vadd.f32 %v393_v36, %v2354_v18  ;;  %v2385_v40 = vadd.f32 %v506_v37, %v2356_v19 }
 0x11e   :  { %1922 = vpow2.f32 %v1594_v33  ;;  %v1597_v41 = vmul.f32 -1.442695, %v2378_v35  ;;  %v397_v42 = vpop.f32.mrf.mxu0  ;;  %v510_v43 = vpop.f32.mrf.mxu1 }
 0x11f   :  { %1924 = vpow2.f32 %v1595_v38  ;;  %v1596_v44 = vmul.f32 -1.442695, %v2382_v39  ;;  %v1598_v45 = vmul.f32 -1.442695, %v2385_v40  ;;  %v2391_v46 = vadd.f32 %v397_v42, %v2350_v16 }
 0x120   :  { %1926 = vpow2.f32 %v1597_v41  ;;  %v2394_v47 = vadd.f32 %v510_v43, %v2352_v17  ;;  %v399_v48 = vpop.f32.mrf.mxu0  ;;  %v512_v49 = vpop.f32.mrf.mxu1 }
 0x121   :  { %1928 = vpow2.f32 %v1596_v44  ;;  %v1599_v50 = vmul.f32 -1.442695, %v2391_v46  ;;  %v2398_v51 = vadd.f32 %v399_v48, %v2354_v18  ;;  %v2401_v52 = vadd.f32 %v512_v49, %v2356_v19 }
 0x122   :  { %1930 = vpow2.f32 %v1598_v45  ;;  %v1601_v53 = vmul.f32 -1.442695, %v2394_v47  ;;  %v401_v54 = vpop.f32.mrf.mxu0  ;;  %v514_v55 = vpop.f32.mrf.mxu1 }
 0x123   :  { %1932 = vpow2.f32 %v1599_v50  ;;  %v1600_v56 = vmul.f32 -1.442695, %v2398_v51  ;;  %v1602_v57 = vmul.f32 -1.442695, %v2401_v52  ;;  %v2407_v58 = vadd.f32 %v401_v54, %v2350_v16 }
 0x124   :  { %1934 = vpow2.f32 %v1601_v53  ;;  %v2410_v59 = vadd.f32 %v514_v55, %v2352_v17  ;;  %v403_v60 = vpop.f32.mrf.mxu0  ;;  %v516_v61 = vpop.f32.mrf.mxu1 }
 0x125   :  { %1936 = vpow2.f32 %v1600_v56  ;;  %v1603_v62 = vmul.f32 -1.442695, %v2407_v58  ;;  %v2414_v63 = vadd.f32 %v403_v60, %v2354_v18  ;;  %v2417_v0 = vadd.f32 %v516_v61, %v2356_v19 }
 0x126   :  { %1938 = vpow2.f32 %v1602_v57  ;;  %v1605_v1 = vmul.f32 -1.442695, %v2410_v59  ;;  %v407_v2 = vpop.f32.mrf.mxu0  ;;  %v520_v3 = vpop.f32.mrf.mxu1 }
 0x127   :  { %1940 = vpow2.f32 %v1603_v62  ;;  %v1604_v4 = vmul.f32 -1.442695, %v2414_v63  ;;  %v1606_v5 = vmul.f32 -1.442695, %v2417_v0  ;;  %v2423_v53 = vadd.f32 %v407_v2, %v2350_v16 }
 0x128   :  { %v1917_v6 = vpop.eup %1916  ;;  %1942 = vpow2.f32 %v1605_v1  ;;  %v409_v7 = vpop.f32.mrf.mxu0  ;;  %v2426_v56 = vadd.f32 %v520_v3, %v2352_v17 }
 0x129   :  { %v522_v8 = vpop.f32.mrf.mxu1  ;;  %v1919_v9 = vpop.eup %1918  ;;  %v771_v10 = vadd.f32 1.0, %v1917_v6  ;;  %1944 = vpow2.f32 %v1604_v4  ;;  %v2429_v61 = vadd.f32 %v409_v7, %v2354_v18  ;;  %v1607_v3 = vmul.f32 -1.442695, %v2423_v53 }
 0x12a   :  { %v1921_v11 = vpop.eup %1920  ;;  %v773_v12 = vadd.f32 1.0, %v1919_v9  ;;  %1946 = vpow2.f32 %v1606_v5  ;;  %v411_v13 = vpop.f32.mrf.mxu0  ;;  %v2432_v4 = vadd.f32 %v522_v8, %v2356_v19 }
 0x12b   :  { %v524_v14 = vpop.f32.mrf.mxu1  ;;  %v1923_v15 = vpop.eup %1922  ;;  %1948 = vrcp.f32 %v771_v10  ;;  %v772_v20 = vadd.f32 1.0, %v1921_v11  ;;  %v2436_v10 = vadd.f32 %v411_v13, %v2350_v16 }
 0x12c   :  { %v1925_v21 = vpop.eup %1924  ;;  %1950 = vrcp.f32 %v773_v12  ;;  %v774_v24 = vadd.f32 1.0, %v1923_v15  ;;  %v413_v31 = vpop.f32.mrf.mxu0  ;;  %v1609_v12 = vmul.f32 -1.442695, %v2426_v56  ;;  %v2442_v15 = vadd.f32 %v524_v14, %v2352_v17 }
 0x12d   :  { %v1927_v25 = vpop.eup %1926  ;;  %1952 = vrcp.f32 %v772_v20  ;;  %v775_v26 = vadd.f32 1.0, %v1925_v21  ;;  %v526_v32 = vpop.f32.mrf.mxu1  ;;  %v1608_v20 = vmul.f32 -1.442695, %v2429_v61  ;;  %v2446_v21 = vadd.f32 %v413_v31, %v2354_v18 }
 0x12e   :  { %v1929_v27 = vpop.eup %1928  ;;  %1954 = vrcp.f32 %v774_v24  ;;  %v777_v30 = vadd.f32 1.0, %v1927_v25  ;;  %v417_v45 = vpop.f32.mrf.mxu0  ;;  %v1610_v13 = vmul.f32 -1.442695, %v2432_v4  ;;  %v2450_v25 = vadd.f32 %v526_v32, %v2356_v19 }
 0x12f   :  { %v1931_v33 = vpop.eup %1930  ;;  %1956 = vrcp.f32 %v775_v26  ;;  %v776_v36 = vadd.f32 1.0, %v1929_v27  ;;  %v530_v48 = vpop.f32.mrf.mxu1  ;;  %v1611_v14 = vmul.f32 -1.442695, %v2436_v10  ;;  %v1613_v31 = vmul.f32 -1.442695, %v2442_v15 }
 0x130   :  { %v1933_v37 = vpop.eup %1932  ;;  %1958 = vrcp.f32 %v777_v30  ;;  %v778_v38 = vadd.f32 1.0, %v1931_v33  ;;  %v419_v2 = vpop.f32.mrf.mxu0  ;;  %v2454_v33 = vadd.f32 %v417_v45, %v2350_v16  ;;  %v1612_v32 = vmul.f32 -1.442695, %v2446_v21 }
 0x131   :  { %v1935_v41 = vpop.eup %1934  ;;  %1960 = vrcp.f32 %v776_v36  ;;  %v779_v42 = vadd.f32 1.0, %v1933_v37  ;;  %v532_v5 = vpop.f32.mrf.mxu1  ;;  %v2458_v37 = vadd.f32 %v530_v48, %v2352_v17 }
 0x132   :  { %v1937_v43 = vpop.eup %1936  ;;  %1962 = vrcp.f32 %v778_v38  ;;  %v781_v44 = vadd.f32 1.0, %v1935_v41  ;;  %v421_v26 = vpop.f32.mrf.mxu0  ;;  %v2462_v41 = vadd.f32 %v419_v2, %v2354_v18  ;;  %v1615_v48 = vmul.f32 -1.442695, %v2454_v33 }
 0x133   :  { %v1939_v49 = vpop.eup %1938  ;;  %1964 = vrcp.f32 %v779_v42  ;;  %v780_v50 = vadd.f32 1.0, %v1937_v43  ;;  %v534_v27 = vpop.f32.mrf.mxu1  ;;  %v2465_v42 = vadd.f32 %v532_v5, %v2356_v19 }
 0x134   :  { %v1941_v54 = vpop.eup %1940  ;;  %1966 = vrcp.f32 %v781_v44  ;;  %v782_v55 = vadd.f32 1.0, %v1939_v49  ;;  %v1614_v44 = vmul.f32 -1.442695, %v2450_v25  ;;  %v423_v45 = vpop.f32.mrf.mxu0 }
 0x135   :  { %v1943_v57 = vpop.eup %1942  ;;  %1968 = vrcp.f32 %v780_v50  ;;  %v783_v60 = vadd.f32 1.0, %v1941_v54  ;;  %v536_v49 = vpop.f32.mrf.mxu1  ;;  %v2470_v54 = vadd.f32 %v421_v26, %v2350_v16  ;;  %v1618_v2 = vmul.f32 -1.442695, %v2465_v42 }
 0x136   :  { %v1945_v62 = vpop.eup %1944  ;;  %1970 = vrcp.f32 %v782_v55  ;;  %v785_v1 = vadd.f32 1.0, %v1943_v57  ;;  %v1617_v57 = vmul.f32 -1.442695, %v2458_v37  ;;  %v2483_v5 = vadd.f32 %v423_v45, %v2354_v18 }
 0x137   :  { %v1947_v6 = vpop.eup %1946  ;;  %1972 = vrcp.f32 %v783_v60  ;;  %v784_v9 = vadd.f32 1.0, %v1945_v62  ;;  %v2476_v60 = vadd.f32 %v534_v27, %v2352_v17 }
 0x138   :  { %v2438_v11 = vpop.eup %1948  ;;  %1974 = vrcp.f32 %v785_v1  ;;  %v786_v7 = vadd.f32 1.0, %v1947_v6  ;;  %v1616_v1 = vmul.f32 -1.442695, %v2462_v41 }
 0x139   :  { %v1951_v8 = vpop.eup %1950  ;;  %1976 = vrcp.f32 %v784_v9 }
 0x13a   :  { %v1953_v24 = vpop.eup %1952  ;;  %1978 = vrcp.f32 %v786_v7  ;;  %v2488_v7 = vadd.f32 %v536_v49, %v2356_v19  ;;  %v965_v45 = vmul.f32 %v1951_v8, %v2362_v23 }
 0x13b   :  { %v1955_v30 = vpop.eup %1954  ;;  %1980 = vpow2.f32 %v1607_v3 }
 0x13c   :  { %v1957_v36 = vpop.eup %1956  ;;  %1982 = vpow2.f32 %v1609_v12  ;;  %v427_v12 = vpop.f32.mrf.mxu0 }
 0x13d   :  { %v1959_v38 = vpop.eup %1958  ;;  %1984 = vpow2.f32 %v1608_v20  ;;  %v2490_v20 = vpop.f32.mrf.mxu1  ;;  %v967_v26 = vmul.f32 %v1957_v36, %v2375_v34  ;;  %v1620_v34 = vmul.f32 -1.442695, %v2483_v5  ;;  %v1622_v36 = vmul.f32 -1.442695, %v2488_v7 }
 0x13e   :  { %v1961_v43 = vpop.eup %1960  ;;  %1986 = vpow2.f32 %v1610_v13  ;;  %v969_v27 = vmul.f32 %v1959_v38, %v2378_v35  ;;  %v429_v38 = vpop.f32.mrf.mxu0 }
 0x13f   :  { %v1963_v50 = vpop.eup %1962  ;;  %1988 = vpow2.f32 %v1611_v14  ;;  %v968_v9 = vmul.f32 %v1961_v43, %v2382_v39  ;;  %v1619_v14 = vmul.f32 -1.442695, %v2470_v54  ;;  %v964_v39 = vmul.f32 %v1953_v24, %v2367_v28  ;;  %v2503_v28 = vpop.f32.mrf.mxu1 }
 0x140   :  { %v2472_v55 = vpop.eup %1964  ;;  %1990 = vpow2.f32 %v1613_v31  ;;  %v970_v3 = vmul.f32 %v1963_v50, %v2385_v40  ;;  %v966_v40 = vmul.f32 %v1955_v30, %v2370_v29  ;;  %v1029_v50 = vpack.c.bf16 %v969_v27, %v965_v45 }
 0x141   :  { %v2478_v62 = vpop.eup %1966  ;;  %1992 = vpow2.f32 %v1612_v32  ;;  %v1621_v32 = vmul.f32 -1.442695, %v2476_v60  ;;  %v1028_v29 = vpack.c.bf16 %v968_v9, %v964_v39 }
 0x142   :  { %v1969_v6 = vpop.eup %1968  ;;  %1994 = vpow2.f32 %v1614_v44  ;;  %v963_v44 = vmul.f32 %v2438_v11, %v2359_v22  ;;  %v1030_v24 = vpack.c.bf16 %v970_v3, %v966_v40  ;;  %v2510_v3 = vadd.f32 %v427_v12, %v2350_v16 }
 0x143   :  { %v1971_v13 = vpop.eup %1970  ;;  %1996 = vpow2.f32 %v1615_v48  ;;  %1354 = vmatprep.mubr.bf16.mxu0 %v1028_v29 }
 0x144   :  { %v1973_v31 = vpop.eup %1972  ;;  %1998 = vpow2.f32 %v1617_v57  ;;  %v1027_v49 = vpack.c.bf16 %v967_v26, %v963_v44  ;;  %1451 = vmatprep.mubr.bf16.mxu1 %v1030_v24  ;;  %v2505_v57 = vpop.f32.mrf.mxu0  ;;  %v974_v44 = vmul.f32 %v1971_v13, %v2401_v52 }
 0x145   :  { %v1975_v43 = vpop.eup %1974  ;;  %2000 = vpow2.f32 %v1616_v1  ;;  %1452 = vmatmul.mubr.bf16.vlgmr.msra.gmra.mxu1 %v1029_v50  ;;  %v2507_v1 = vpop.f32.mrf.mxu1 }
 0x146   :  { %v1977_v35 = vpop.eup %1976  ;;  %2002 = vpow2.f32 %v1618_v2  ;;  %1355 = vmatmul.mubr.bf16.vlgmr.msra.gmra.mxu0 %v1027_v49  ;;  %v977_v12 = vmul.f32 %v1975_v43, %v2410_v59  ;;  %v433_v24 = vpop.f32.mrf.mxu0  ;;  %v2524_v43 = vadd.f32 %v2490_v20, %v2352_v17  ;;  %v2527_v49 = vadd.f32 %v429_v38, %v2354_v18 }
 0x147   :  { %v1979_v30 = vpop.eup %1978  ;;  %2004 = vpow2.f32 %v1619_v14  ;;  %v976_v27 = vmul.f32 %v1977_v35, %v2414_v63  ;;  %v546_v63 = vpop.f32.mrf.mxu1  ;;  %v1623_v20 = vmul.f32 -1.442695, %v2510_v3 }
 0x148   :  { %v1981_v48 = vpop.eup %1980  ;;  %2006 = vpow2.f32 %v1621_v32  ;;  %v978_v14 = vmul.f32 %v1979_v30, %v2417_v0  ;;  %v972_v32 = vmul.f32 %v1969_v6, %v2398_v51  ;;  %v971_v0 = vmul.f32 %v2472_v55, %v2391_v46  ;;  %v437_v55 = vpop.f32.mrf.mxu0 }
 0x149   :  { %v1983_v22 = vpop.eup %1982  ;;  %v787_v23 = vadd.f32 1.0, %v1981_v48  ;;  %2008 = vpow2.f32 %v1620_v34  ;;  %v973_v51 = vmul.f32 %v2478_v62, %v2394_v47  ;;  %v550_v62 = vpop.f32.mrf.mxu1 }
 0x14a   :  { %v1985_v11 = vpop.eup %1984  ;;  %v789_v8 = vadd.f32 1.0, %v1983_v22  ;;  %2010 = vpow2.f32 %v1622_v36  ;;  %v975_v36 = vmul.f32 %v1973_v31, %v2407_v58  ;;  %v1032_v30 = vpack.c.bf16 %v976_v27, %v972_v32  ;;  %v439_v32 = vpop.f32.mrf.mxu0 }
 0x14b   :  { %v1987_v2 = vpop.eup %1986  ;;  %2012 = vrcp.f32 %v787_v23  ;;  %v788_v9 = vadd.f32 1.0, %v1985_v11  ;;  %v1034_v58 = vpack.c.bf16 %v978_v14, %v974_v44  ;;  %v1033_v48 = vpack.c.bf16 %v977_v12, %v973_v51  ;;  %v552_v44 = vpop.f32.mrf.mxu1 }
 0x14c   :  { %v1989_v26 = vpop.eup %1988  ;;  %2014 = vrcp.f32 %v789_v8  ;;  %v790_v39 = vadd.f32 1.0, %v1987_v2  ;;  %1362 = vmatprep.mubr.bf16.mxu0 %v1032_v30  ;;  %v1031_v50 = vpack.c.bf16 %v975_v36, %v971_v0  ;;  %v2542_v36 = vadd.f32 %v2507_v1, %v2352_v17 }
 0x14d   :  { %v1991_v40 = vpop.eup %1990  ;;  %2016 = vrcp.f32 %v788_v9  ;;  %v791_v45 = vadd.f32 1.0, %v1989_v26  ;;  %1459 = vmatprep.mubr.bf16.mxu1 %v1034_v58  ;;  %v1625_v9 = vmul.f32 -1.442695, %v2524_v43  ;;  %v2533_v26 = vadd.f32 %v2503_v28, %v2356_v19 }
 0x14e   :  { %v1993_v34 = vpop.eup %1992  ;;  %2018 = vrcp.f32 %v790_v39  ;;  %v793_v29 = vadd.f32 1.0, %v1991_v40  ;;  %1363 = vmatmul.mubr.bf16.gmra.mxu0 %v1031_v50  ;;  %1460 = vmatmul.mubr.bf16.gmra.mxu1 %v1033_v48  ;;  %v1624_v39 = vmul.f32 -1.442695, %v2527_v49  ;;  %v2538_v40 = vadd.f32 %v2505_v57, %v2350_v16 }
 0x14f   :  { %v1995_v35 = vpop.eup %1994  ;;  %2020 = vrcp.f32 %v791_v45  ;;  %v792_v52 = vadd.f32 1.0, %v1993_v34  ;;  %v2545_v28 = vadd.f32 %v433_v24, %v2354_v18  ;;  %v2551_v57 = vadd.f32 %v437_v55, %v2350_v16 }
 0x150   :  { %v1997_v6 = vpop.eup %1996  ;;  %2022 = vrcp.f32 %v793_v29  ;;  %v794_v13 = vadd.f32 1.0, %v1995_v35  ;;  %v2548_v35 = vadd.f32 %v546_v63, %v2356_v19  ;;  %v2554_v51 = vadd.f32 %v550_v62, %v2352_v17  ;;  %v441_v63 = vpop.f32.mrf.mxu0 }
 0x151   :  { %v1999_v31 = vpop.eup %1998  ;;  %2024 = vrcp.f32 %v792_v52  ;;  %v795_v59 = vadd.f32 1.0, %v1997_v6  ;;  %v2557_v1 = vadd.f32 %v439_v32, %v2354_v18  ;;  %v2560_v24 = vadd.f32 %v552_v44, %v2356_v19 }
 0x152   :  { %v2001_v46 = vpop.eup %2000  ;;  %2026 = vrcp.f32 %v794_v13  ;;  %v797_v47 = vadd.f32 1.0, %v1999_v31  ;;  %v1626_v6 = vmul.f32 -1.442695, %v2533_v26  ;;  %v554_v13 = vpop.f32.mrf.mxu1  ;;  %v1627_v58 = vmul.f32 -1.442695, %v2538_v40 }
 0x153   :  { %v2003_v22 = vpop.eup %2002  ;;  %2028 = vrcp.f32 %v795_v59  ;;  %v796_v23 = vadd.f32 1.0, %v2001_v46  ;;  %v1629_v31 = vmul.f32 -1.442695, %v2542_v36  ;;  %v1628_v46 = vmul.f32 -1.442695, %v2545_v28 }
 0x154   :  { %v2005_v11 = vpop.eup %2004  ;;  %2030 = vrcp.f32 %v797_v47  ;;  %v798_v8 = vadd.f32 1.0, %v2003_v22  ;;  %v1630_v47 = vmul.f32 -1.442695, %v2548_v35  ;;  %v1631_v55 = vmul.f32 -1.442695, %v2551_v57 }
 0x155   :  { %v2007_v38 = vpop.eup %2006  ;;  %2032 = vrcp.f32 %v796_v23  ;;  %v799_v2 = vadd.f32 1.0, %v2005_v11  ;;  %v1633_v50 = vmul.f32 -1.442695, %v2554_v51  ;;  %v1632_v48 = vmul.f32 -1.442695, %v2557_v1 }
 0x156   :  { %v2009_v27 = vpop.eup %2008  ;;  %2034 = vrcp.f32 %v798_v8  ;;  %v801_v14 = vadd.f32 1.0, %v2007_v38  ;;  %v1634_v22 = vmul.f32 -1.442695, %v2560_v24  ;;  %v2573_v8 = vadd.f32 %v441_v63, %v2350_v16  ;;  %v443_v38 = vpop.f32.mrf.mxu0 }
 0x157   :  { %v2011_v45 = vpop.eup %2010  ;;  %2036 = vrcp.f32 %v799_v2  ;;  %v800_v34 = vadd.f32 1.0, %v2009_v27  ;;  %v556_v2 = vpop.f32.mrf.mxu1 }
 0x158   :  { %v2013_v12 = vpop.eup %2012  ;;  %2038 = vrcp.f32 %v801_v14  ;;  %v802_v29 = vadd.f32 1.0, %v2011_v45 }
 0x159   :  { %v2015_v0 = vpop.eup %2014  ;;  %2040 = vrcp.f32 %v800_v34 }
 0x15a   :  { %v2017_v52 = vpop.eup %2016  ;;  %2042 = vrcp.f32 %v802_v29  ;;  %v981_v29 = vmul.f32 %v2015_v0, %v2426_v56  ;;  %v1635_v56 = vmul.f32 -1.442695, %v2573_v8 }
 0x15b   :  { %v2019_v30 = vpop.eup %2018  ;;  %2044 = vpow2.f32 %v1623_v20  ;;  %v2576_v20 = vadd.f32 %v554_v13, %v2352_v17  ;;  %v980_v27 = vmul.f32 %v2017_v52, %v2429_v61  ;;  %v2591_v52 = vpop.f32.mrf.mxu0 }
 0x15c   :  { %v2021_v59 = vpop.eup %2020  ;;  %2046 = vpow2.f32 %v1625_v9  ;;  %v982_v44 = vmul.f32 %v2019_v30, %v2432_v4 }
 0x15d   :  { %v2023_v62 = vpop.eup %2022  ;;  %2048 = vpow2.f32 %v1624_v39  ;;  %v983_v11 = vmul.f32 %v2021_v59, %v2436_v10  ;;  %v979_v10 = vmul.f32 %v2013_v12, %v2423_v53  ;;  %v2593_v53 = vpop.f32.mrf.mxu1  ;;  %v1637_v13 = vmul.f32 -1.442695, %v2576_v20 }
 0x15e   :  { %v2025_v23 = vpop.eup %2024  ;;  %2050 = vpow2.f32 %v1626_v6  ;;  %v985_v14 = vmul.f32 %v2023_v62, %v2442_v15  ;;  %v2586_v6 = vadd.f32 %v443_v38, %v2354_v18 }
 0x15f   :  { %v2027_v9 = vpop.eup %2026  ;;  %v984_v39 = vmul.f32 %v2025_v23, %v2446_v21  ;;  %2052 = vpow2.f32 %v1627_v58  ;;  %v2589_v21 = vadd.f32 %v556_v2, %v2356_v19 }
 0x160   :  { %v2029_v32 = vpop.eup %2028  ;;  %v986_v45 = vmul.f32 %v2027_v9, %v2450_v25  ;;  %2054 = vpow2.f32 %v1629_v31  ;;  %v1035_v25 = vpack.c.bf16 %v983_v11, %v979_v10  ;;  %v1037_v0 = vpack.c.bf16 %v985_v14, %v981_v29 }
 0x161   :  { %v2031_v34 = vpop.eup %2030  ;;  %2056 = vpow2.f32 %v1628_v46  ;;  %v1036_v61 = vpack.c.bf16 %v984_v39, %v980_v27  ;;  %v1636_v58 = vmul.f32 -1.442695, %v2586_v6  ;;  %v1638_v46 = vmul.f32 -1.442695, %v2589_v21 }
 0x162   :  { %v2033_v15 = vpop.eup %2032  ;;  %2058 = vpow2.f32 %v1630_v47  ;;  %v1038_v4 = vpack.c.bf16 %v986_v45, %v982_v44  ;;  %v449_v47 = vpop.f32.mrf.mxu0  ;;  %v987_v38 = vmul.f32 %v2029_v32, %v2454_v33  ;;  %v989_v9 = vmul.f32 %v2031_v34, %v2458_v37 }
 0x163   :  { %v2035_v12 = vpop.eup %2034  ;;  %2060 = vpow2.f32 %v1631_v55  ;;  %1370 = vmatprep.mubr.bf16.mxu0 %v1036_v61  ;;  %v2600_v55 = vpop.f32.mrf.mxu1 }
 0x164   :  { %v2037_v63 = vpop.eup %2036  ;;  %2062 = vpow2.f32 %v1633_v50  ;;  %1467 = vmatprep.mubr.bf16.mxu1 %v1038_v4  ;;  %1371 = vmatmul.mubr.bf16.gmra.mxu0 %v1035_v25  ;;  %v988_v50 = vmul.f32 %v2033_v15, %v2462_v41  ;;  %v990_v2 = vmul.f32 %v2035_v12, %v2465_v42 }
 0x165   :  { %v2039_v30 = vpop.eup %2038  ;;  %2064 = vpow2.f32 %v1632_v48  ;;  %1468 = vmatmul.mubr.bf16.gmra.mxu1 %v1037_v0  ;;  %v991_v59 = vmul.f32 %v2037_v63, %v2470_v54  ;;  %v2611_v63 = vadd.f32 %v2591_v52, %v2350_v16 }
 0x166   :  { %v2041_v31 = vpop.eup %2040  ;;  %2066 = vpow2.f32 %v1634_v22  ;;  %v993_v23 = vmul.f32 %v2039_v30, %v2476_v60  ;;  %v451_v60 = vpop.f32.mrf.mxu0 }
 0x167   :  { %v2043_v62 = vpop.eup %2042  ;;  %v992_v11 = vmul.f32 %v2041_v31, %v2483_v5  ;;  %2068 = vpow2.f32 %v1635_v56  ;;  %v564_v5 = vpop.f32.mrf.mxu1  ;;  %v1039_v44 = vpack.c.bf16 %v991_v59, %v987_v38  ;;  %v1639_v38 = vmul.f32 -1.442695, %v2611_v63 }
 0x168   :  { %v2045_v48 = vpop.eup %2044  ;;  %v994_v54 = vmul.f32 %v2043_v62, %v2488_v7  ;;  %2070 = vpow2.f32 %v1637_v13  ;;  %v1041_v42 = vpack.c.bf16 %v993_v23, %v989_v9  ;;  %v453_v15 = vpop.f32.mrf.mxu0 }
 0x169   :  { %v2047_v22 = vpop.eup %2046  ;;  %v803_v27 = vadd.f32 1.0, %v2045_v48  ;;  %2072 = vpow2.f32 %v1636_v58  ;;  %v1040_v14 = vpack.c.bf16 %v992_v11, %v988_v50  ;;  %v566_v4 = vpop.f32.mrf.mxu1  ;;  %v2615_v58 = vadd.f32 %v2593_v53, %v2352_v17 }
 0x16a   :  { %v2049_v41 = vpop.eup %2048  ;;  %v805_v39 = vadd.f32 1.0, %v2047_v22  ;;  %2074 = vpow2.f32 %v1638_v46  ;;  %v1042_v10 = vpack.c.bf16 %v994_v54, %v990_v2  ;;  %v457_v46 = vpop.f32.mrf.mxu0  ;;  %v2618_v11 = vadd.f32 %v449_v47, %v2354_v18 }
 0x16b   :  { %v2051_v45 = vpop.eup %2050  ;;  %2076 = vrcp.f32 %v803_v27  ;;  %v804_v33 = vadd.f32 1.0, %v2049_v41  ;;  %1378 = vmatprep.mubr.bf16.mxu0 %v1040_v14  ;;  %v570_v62 = vpop.f32.mrf.mxu1  ;;  %v1641_v54 = vmul.f32 -1.442695, %v2615_v58  ;;  %v2624_v22 = vadd.f32 %v2600_v55, %v2356_v19 }
 0x16c   :  { %v2053_v7 = vpop.eup %2052  ;;  %2078 = vrcp.f32 %v805_v39  ;;  %v806_v32 = vadd.f32 1.0, %v2051_v45  ;;  %1475 = vmatprep.mubr.bf16.mxu1 %v1042_v10  ;;  %1379 = vmatmul.mubr.bf16.gmra.mxu0 %v1039_v44  ;;  %v2627_v47 = vadd.f32 %v451_v60, %v2350_v16  ;;  %v2630_v14 = vadd.f32 %v564_v5, %v2352_v17  ;;  %v459_v41 = vpop.f32.mrf.mxu0 }
 0x16d   :  { %v2055_v37 = vpop.eup %2054  ;;  %2080 = vrcp.f32 %v804_v33  ;;  %v807_v34 = vadd.f32 1.0, %v2053_v7  ;;  %1476 = vmatmul.mubr.bf16.gmra.mxu1 %v1041_v42  ;;  %v572_v39 = vpop.f32.mrf.mxu1  ;;  %v1640_v45 = vmul.f32 -1.442695, %v2618_v11  ;;  %v2634_v33 = vadd.f32 %v453_v15, %v2354_v18 }
 0x16e   :  { %v2057_v29 = vpop.eup %2056  ;;  %2082 = vrcp.f32 %v806_v32  ;;  %v809_v61 = vadd.f32 1.0, %v2055_v37  ;;  %v2637_v7 = vadd.f32 %v566_v4, %v2356_v19  ;;  %v2640_v60 = vadd.f32 %v457_v46, %v2350_v16  ;;  %v461_v15 = vpop.f32.mrf.mxu0 }
 0x16f   :  { %v2059_v25 = vpop.eup %2058  ;;  %2084 = vrcp.f32 %v807_v34  ;;  %v808_v12 = vadd.f32 1.0, %v2057_v29  ;;  %v2643_v32 = vadd.f32 %v570_v62, %v2352_v17  ;;  %v2646_v37 = vadd.f32 %v459_v41, %v2354_v18 }
 0x170   :  { %v2061_v56 = vpop.eup %2060  ;;  %2086 = vrcp.f32 %v809_v61  ;;  %v810_v0 = vadd.f32 1.0, %v2059_v25  ;;  %v2649_v34 = vadd.f32 %v572_v39, %v2356_v19  ;;  %v1642_v61 = vmul.f32 -1.442695, %v2624_v22 }
 0x171   :  { %v2063_v13 = vpop.eup %2062  ;;  %2088 = vrcp.f32 %v808_v12  ;;  %v811_v30 = vadd.f32 1.0, %v2061_v56  ;;  %v1643_v25 = vmul.f32 -1.442695, %v2627_v47  ;;  %v1645_v12 = vmul.f32 -1.442695, %v2630_v14  ;;  %v574_v56 = vpop.f32.mrf.mxu1 }
 0x172   :  { %v2065_v31 = vpop.eup %2064  ;;  %2090 = vrcp.f32 %v810_v0  ;;  %v813_v59 = vadd.f32 1.0, %v2063_v13  ;;  %v1644_v13 = vmul.f32 -1.442695, %v2634_v33  ;;  %v1649_v46 = vmul.f32 -1.442695, %v2643_v32 }
 0x173   :  { %v2067_v50 = vpop.eup %2066  ;;  %2092 = vrcp.f32 %v811_v30  ;;  %v812_v23 = vadd.f32 1.0, %v2065_v31  ;;  %v1646_v30 = vmul.f32 -1.442695, %v2637_v7  ;;  %v1647_v31 = vmul.f32 -1.442695, %v2640_v60  ;;  %v576_v41 = vpop.f32.mrf.mxu1 }
 0x174   :  { %v2069_v52 = vpop.eup %2068  ;;  %2094 = vrcp.f32 %v813_v59  ;;  %v814_v48 = vadd.f32 1.0, %v2067_v50  ;;  %v1648_v62 = vmul.f32 -1.442695, %v2646_v37  ;;  %v1650_v50 = vmul.f32 -1.442695, %v2649_v34 }
 0x175   :  { %v2071_v2 = vpop.eup %2070  ;;  %2096 = vrcp.f32 %v812_v23  ;;  %v815_v53 = vadd.f32 1.0, %v2069_v52 }
 0x176   :  { %v2073_v9 = vpop.eup %2072  ;;  %2098 = vrcp.f32 %v814_v48  ;;  %v817_v27 = vadd.f32 1.0, %v2071_v2  ;;  %v2662_v48 = vadd.f32 %v461_v15, %v2350_v16  ;;  %v463_v2 = vpop.f32.mrf.mxu0 }
 0x177   :  { %v2075_v10 = vpop.eup %2074  ;;  %2100 = vrcp.f32 %v815_v53  ;;  %v816_v44 = vadd.f32 1.0, %v2073_v9 }
 0x178   :  { %v2077_v55 = vpop.eup %2076  ;;  %2102 = vrcp.f32 %v817_v27  ;;  %v818_v42 = vadd.f32 1.0, %v2075_v10 }
 0x179   :  { %v2079_v5 = vpop.eup %2078  ;;  %2104 = vrcp.f32 %v816_v44 }
 0x17a   :  { %v2081_v29 = vpop.eup %2080  ;;  %2106 = vrcp.f32 %v818_v42  ;;  %v997_v44 = vmul.f32 %v2079_v5, %v2524_v43 }
 0x17b   :  { %v2083_v4 = vpop.eup %2082  ;;  %2108 = vpow2.f32 %v1639_v38  ;;  %v2665_v38 = vadd.f32 %v574_v56, %v2352_v17 }
 0x17c   :  { %v2085_v0 = vpop.eup %2084  ;;  %2110 = vpow2.f32 %v1641_v54  ;;  %v996_v54 = vmul.f32 %v2081_v29, %v2527_v49  ;;  %v998_v10 = vmul.f32 %v2083_v4, %v2533_v26  ;;  %v2675_v49 = vadd.f32 %v463_v2, %v2354_v18 }
 0x17d   :  { %v2087_v59 = vpop.eup %2086  ;;  %2112 = vpow2.f32 %v1640_v45  ;;  %v999_v52 = vmul.f32 %v2085_v0, %v2538_v40  ;;  %v995_v40 = vmul.f32 %v2077_v55, %v2510_v3  ;;  %v1651_v26 = vmul.f32 -1.442695, %v2662_v48 }
 0x17e   :  { %v2089_v23 = vpop.eup %2088  ;;  %2114 = vpow2.f32 %v1642_v61  ;;  %v1001_v9 = vmul.f32 %v2087_v59, %v2542_v36  ;;  %v1653_v43 = vmul.f32 -1.442695, %v2665_v38  ;;  %v1652_v5 = vmul.f32 -1.442695, %v2675_v49 }
 0x17f   :  { %v2091_v53 = vpop.eup %2090  ;;  %v1000_v27 = vmul.f32 %v2089_v23, %v2545_v28  ;;  %2116 = vpow2.f32 %v1643_v25  ;;  %v2678_v28 = vadd.f32 %v576_v41, %v2356_v19  ;;  %v1043_v3 = vpack.c.bf16 %v999_v52, %v995_v40 }
 0x180   :  { %v2093_v39 = vpop.eup %2092  ;;  %v1002_v16 = vmul.f32 %v2091_v53, %v2548_v35  ;;  %2118 = vpow2.f32 %v1645_v12  ;;  %v1045_v35 = vpack.c.bf16 %v1001_v9, %v997_v44 }
 0x181   :  { %v2095_v17 = vpop.eup %2094  ;;  %2120 = vpow2.f32 %v1644_v13  ;;  %v1044_v36 = vpack.c.bf16 %v1000_v27, %v996_v54  ;;  %v1654_v15 = vmul.f32 -1.442695, %v2678_v28  ;;  %v1003_v13 = vmul.f32 %v2093_v39, %v2551_v57 }
 0x182   :  { %v2097_v45 = vpop.eup %2096  ;;  %2122 = vpow2.f32 %v1646_v30  ;;  %v1046_v42 = vpack.c.bf16 %v1002_v16, %v998_v10  ;;  %v1005_v59 = vmul.f32 %v2095_v17, %v2554_v51 }
 0x183   :  { %v2099_v55 = vpop.eup %2098  ;;  %2124 = vpow2.f32 %v1647_v31  ;;  %1386 = vmatprep.mubr.bf16.mxu0 %v1044_v36  ;;  %v1004_v25 = vmul.f32 %v2097_v45, %v2557_v1 }
 0x184   :  { %v2101_v29 = vpop.eup %2100  ;;  %2126 = vpow2.f32 %v1649_v46  ;;  %1483 = vmatprep.mubr.bf16.mxu1 %v1046_v42  ;;  %1387 = vmatmul.mubr.bf16.gmra.mxu0 %v1043_v3  ;;  %v1006_v30 = vmul.f32 %v2099_v55, %v2560_v24 }
 0x185   :  { %v2103_v18 = vpop.eup %2102  ;;  %2128 = vpow2.f32 %v1648_v62  ;;  %1484 = vmatmul.mubr.bf16.gmra.mxu1 %v1045_v35  ;;  %v1007_v61 = vmul.f32 %v2101_v29, %v2573_v8 }
 0x186   :  { %v2105_v19 = vpop.eup %2104  ;;  %2130 = vpow2.f32 %v1650_v50  ;;  %v1009_v12 = vmul.f32 %v2103_v18, %v2576_v20 }
 0x187   :  { %v2107_v4 = vpop.eup %2106  ;;  %v1008_v56 = vmul.f32 %v2105_v19, %v2586_v6  ;;  %2132 = vpow2.f32 %v1651_v26  ;;  %v1047_v6 = vpack.c.bf16 %v1007_v61, %v1003_v13 }
 0x188   :  { %v2109_v0 = vpop.eup %2108  ;;  %v1010_v31 = vmul.f32 %v2107_v4, %v2589_v21  ;;  %2134 = vpow2.f32 %v1653_v43  ;;  %v1049_v57 = vpack.c.bf16 %v1009_v12, %v1005_v59 }
 0x189   :  { %v2111_v8 = vpop.eup %2110  ;;  %v819_v46 = vadd.f32 1.0, %v2109_v0  ;;  %2136 = vpow2.f32 %v1652_v5  ;;  %v1048_v62 = vpack.c.bf16 %v1008_v56, %v1004_v25 }
 0x18a   :  { %v2113_v1 = vpop.eup %2112  ;;  %v821_v50 = vadd.f32 1.0, %v2111_v8  ;;  %2138 = vpow2.f32 %v1654_v15  ;;  %v1050_v20 = vpack.c.bf16 %v1010_v31, %v1006_v30 }
 0x18b   :  { %v2115_v23 = vpop.eup %2114  ;;  %2140 = vrcp.f32 %v819_v46  ;;  %v820_v52 = vadd.f32 1.0, %v2113_v1  ;;  %1394 = vmatprep.mubr.bf16.mxu0 %v1048_v62 }
 0x18c   :  { %v2117_v24 = vpop.eup %2116  ;;  %2142 = vrcp.f32 %v821_v50  ;;  %v822_v21 = vadd.f32 1.0, %v2115_v23  ;;  %1491 = vmatprep.mubr.bf16.mxu1 %v1050_v20  ;;  %1395 = vmatmul.mubr.bf16.gmra.mxu0 %v1047_v6 }
 0x18d   :  { %v2119_v2 = vpop.eup %2118  ;;  %2144 = vrcp.f32 %v820_v52  ;;  %v823_v51 = vadd.f32 1.0, %v2117_v24  ;;  %1492 = vmatmul.mubr.bf16.gmra.mxu1 %v1049_v57 }
 0x18e   :  { %v2121_v53 = vpop.eup %2120  ;;  %2146 = vrcp.f32 %v822_v21  ;;  %v825_v54 = vadd.f32 1.0, %v2119_v2 }
 0x18f   :  { %v2123_v9 = vpop.eup %2122  ;;  %2148 = vrcp.f32 %v823_v51  ;;  %v824_v27 = vadd.f32 1.0, %v2121_v53 }
 0x190   :  { %v2125_v41 = vpop.eup %2124  ;;  %2150 = vrcp.f32 %v825_v54  ;;  %v826_v39 = vadd.f32 1.0, %v2123_v9 }
 0x191   :  { %v2127_v40 = vpop.eup %2126  ;;  %2152 = vrcp.f32 %v824_v27  ;;  %v827_v10 = vadd.f32 1.0, %v2125_v41 }
 0x192   :  { %v2129_v16 = vpop.eup %2128  ;;  %2154 = vrcp.f32 %v826_v39  ;;  %v829_v17 = vadd.f32 1.0, %v2127_v40 }
 0x193   :  { %v2131_v44 = vpop.eup %2130  ;;  %2156 = vrcp.f32 %v827_v10  ;;  %v828_v36 = vadd.f32 1.0, %v2129_v16 }
 0x194   :  { %v2133_v45 = vpop.eup %2132  ;;  %2158 = vrcp.f32 %v829_v17  ;;  %v830_v42 = vadd.f32 1.0, %v2131_v44 }
 0x195   :  { %v2135_v3 = vpop.eup %2134  ;;  %2160 = vrcp.f32 %v828_v36  ;;  %v831_v55 = vadd.f32 1.0, %v2133_v45 }
 0x196   :  { %v2137_v26 = vpop.eup %2136  ;;  %2162 = vrcp.f32 %v830_v42  ;;  %v833_v35 = vadd.f32 1.0, %v2135_v3 }
 0x197   :  { %v2139_v29 = vpop.eup %2138  ;;  %2164 = vrcp.f32 %v831_v55  ;;  %v832_v43 = vadd.f32 1.0, %v2137_v26 }
 0x198   :  { %v2141_v18 = vpop.eup %2140  ;;  %2166 = vrcp.f32 %v833_v35  ;;  %v834_v5 = vadd.f32 1.0, %v2139_v29 }
 0x199   :  { %v2143_v19 = vpop.eup %2142  ;;  %2168 = vrcp.f32 %v832_v43  ;;  %v1011_v59 = vmul.f32 %v2141_v18, %v2611_v63 }
 0x19a   :  { %v2145_v61 = vpop.eup %2144  ;;  %2170 = vrcp.f32 %v834_v5  ;;  %v1013_v50 = vmul.f32 %v2143_v19, %v2615_v58 }
 0x19b   :  { %v2147_v15 = vpop.eup %2146  ;;  %v1012_v13 = vmul.f32 %v2145_v61, %v2618_v11 }
 0x19c   :  { %v2149_v4 = vpop.eup %2148  ;;  %v1014_v46 = vmul.f32 %v2147_v15, %v2624_v22 }
 0x19d   :  { %v2151_v25 = vpop.eup %2150  ;;  %v1015_v56 = vmul.f32 %v2149_v4, %v2627_v47 }
 0x19e   :  { %v2153_v12 = vpop.eup %2152  ;;  %v1017_v30 = vmul.f32 %v2151_v25, %v2630_v14 }
 0x19f   :  { %v2155_v0 = vpop.eup %2154  ;;  %v1016_v31 = vmul.f32 %v2153_v12, %v2634_v33  ;;  %v1051_v23 = vpack.c.bf16 %v1015_v56, %v1011_v59 }
 0x1a0   :  { %v2157_v8 = vpop.eup %2156  ;;  %v1018_v62 = vmul.f32 %v2155_v0, %v2637_v7  ;;  %v1053_v11 = vpack.c.bf16 %v1017_v30, %v1013_v50 }
 0x1a1   :  { %v2159_v1 = vpop.eup %2158  ;;  %v1052_v20 = vpack.c.bf16 %v1016_v31, %v1012_v13  ;;  %v1019_v21 = vmul.f32 %v2157_v8, %v2640_v60  ;;  %v2711_v60 = vld [vmem:[%s2736_s4] ss:$0 sm:$0xff]  ;;  %s2289_s4 = smov [#allocation10]  }
 0x1a2   :  { %v2161_v6 = vpop.eup %2160  ;;  %v1054_v47 = vpack.c.bf16 %v1018_v62, %v1014_v46  ;;  %v1021_v53 = vmul.f32 %v2159_v1, %v2643_v32  ;;  %s1537_s15 = sshll.u32 %s2289_s4, 4  ;;  %s1538_s15 = int_to_ptr.vmem [resolvable:$true] %s1537_s15 }
 0x1a3   :  { %v2163_v52 = vpop.eup %2162  ;;  %1402 = vmatprep.mubr.bf16.mxu0 %v1052_v20  ;;  %v1020_v7 = vmul.f32 %v2161_v6, %v2646_v37  ;;  %s2252_s16 = scalar_lea.vmem %s1538_s15, 2048  ;;  %p2257_p7 = scmp.lt.s32.totalorder %s1538_s15, %s1538_s15 }
 0x1a4   :  { %v2165_v14 = vpop.eup %2164  ;;  %1499 = vmatprep.mubr.bf16.mxu1 %v1054_v47  ;;  %1403 = vmatmul.mubr.bf16.gmra.mxu0 %v1051_v23  ;;  %v1022_v2 = vmul.f32 %v2163_v52, %v2649_v34  ;;  %p2253_p6 = scmp.ne.s32.totalorder %s1538_s15, %s2252_s16  ;;  %p2258_p8 = scmp.lt.s32.totalorder %s2252_s16, %s2252_s16 }
 0x1a5   :  { %v2167_v33 = vpop.eup %2166  ;;  %1500 = vmatmul.mubr.bf16.gmra.mxu1 %v1053_v11  ;;  %v1023_v22 = vmul.f32 %v2165_v14, %v2662_v48 }
 0x1a6   :  { %v2169_v63 = vpop.eup %2168  ;;  %v1025_v58 = vmul.f32 %v2167_v33, %v2665_v38  ;;  %p2259_p9 = por %p2258_p8, %p2257_p7 }
 0x1a7   :  { %v2171_v57 = vpop.eup %2170  ;;  %v1024_v24 = vmul.f32 %v2169_v63, %v2675_v49  ;;  %v1055_v27 = vpack.c.bf16 %v1023_v22, %v1019_v21 }
 0x1a8   :  { %v1026_v51 = vmul.f32 %v2171_v57, %v2678_v28  ;;  %v1057_v48 = vpack.c.bf16 %v1025_v58, %v1021_v53  ;;  %p2260_p10 = pnand %p2259_p9, %p2253_p6 }
 0x1a9   :  { %v1056_v54 = vpack.c.bf16 %v1024_v24, %v1020_v7 }
 0x1aa   :  { %v1058_v9 = vpack.c.bf16 %v1026_v51, %v1022_v2 }
 0x1ab   :  { %1410 = vmatprep.mubr.bf16.mxu0 %v1056_v54 }
 0x1ac   :  { %1507 = vmatprep.mubr.bf16.mxu1 %v1058_v9  ;;  %1411 = vmatmul.mubr.bf16.gmra.mxu0 %v1055_v27 }
 0x1ad   :  { %1508 = vmatmul.mubr.bf16.gmra.mxu1 %v1057_v48 }
 0x205   :  { %v1768_v38 = vpop.f32.mrf.mxu1 }
 0x206   :  { %v1704_v37 = vpop.f32.mrf.mxu0 }
 0x207   :  { %v1769_v49 = vpop.f32.mrf.mxu1 }
 0x208   :  { %v1705_v34 = vpop.f32.mrf.mxu0  ;;  %v1770_v40 = vadd.f32 %v1769_v49, %v1768_v38 }
 0x209   :  { %v1706_v28 = vadd.f32 %v1705_v34, %v1704_v37  ;;  %v1771_v32 = vpop.f32.mrf.mxu1 }
 0x20a   :  { %v1707_v41 = vpop.f32.mrf.mxu0 }
 0x20b   :  { %v1357_v39 = vadd.f32 %v1706_v28, %v2711_v60  ;;  %v1772_v16 = vpop.f32.mrf.mxu1 }
 0x20c   :  { %v1708_v10 = vpop.f32.mrf.mxu0  ;;  %v1773_v45 = vadd.f32 %v1772_v16, %v1771_v32 }
 0x20d   :  { %v1454_v17 = vadd.f32 %v1770_v40, %v1357_v39  ;;  %v1709_v44 = vadd.f32 %v1708_v10, %v1707_v41 }
 0x20e   :  { %v1710_v3 = vpop.f32.mrf.mxu0  ;;  %v1774_v55 = vpop.f32.mrf.mxu1 }
 0x20f   :  { %1516 = vst [vmem:[#allocation10] sm:$0xff] %v1454_v17  ;;  %v1360_v36 = vadd.f32 %v1709_v44, %v2711_v60 }
 0x210   :  { %v1711_v26 = vpop.f32.mrf.mxu0  ;;  %v1775_v35 = vpop.f32.mrf.mxu1 }
 0x211   :  { %v1457_v42 = vadd.f32 %v1773_v45, %v1360_v36  ;;  %v1712_v29 = vadd.f32 %v1711_v26, %v1710_v3  ;;  %v1776_v19 = vadd.f32 %v1775_v35, %v1774_v55 }
 0x212   :  { %v1713_v43 = vpop.f32.mrf.mxu0  ;;  %v1777_v18 = vpop.f32.mrf.mxu1 }
 0x213   :  { %1517 = vst [vmem:[#allocation10 + $0x8] sm:$0xff] %v1457_v42  ;;  %v1365_v5 = vadd.f32 %v1712_v29, %v2711_v60 }
 0x214   :  { %v1714_v61 = vpop.f32.mrf.mxu0  ;;  %v1778_v15 = vpop.f32.mrf.mxu1 }
 0x215   :  { %v1462_v4 = vadd.f32 %v1776_v19, %v1365_v5  ;;  %v1715_v25 = vadd.f32 %v1714_v61, %v1713_v43  ;;  %v1779_v56 = vadd.f32 %v1778_v15, %v1777_v18 }
 0x217   :  { %1518 = vst [vmem:[#allocation10 + $0x10] sm:$0xff] %v1462_v4  ;;  %v1368_v12 = vadd.f32 %v1715_v25, %v2711_v60 }
 0x219   :  { %v1465_v0 = vadd.f32 %v1779_v56, %v1368_v12 }
 0x21b   :  { %1519 = vst [vmem:[#allocation10 + $0x18] sm:$0xff] %v1465_v0 }
 0x224   :  { %v1716_v13 = vpop.f32.mrf.mxu0 }
 0x225   :  { %v1780_v30 = vpop.f32.mrf.mxu1 }
 0x226   :  { %v1717_v31 = vpop.f32.mrf.mxu0 }
 0x227   :  { %v1718_v8 = vadd.f32 %v1717_v31, %v1716_v13  ;;  %v1781_v59 = vpop.f32.mrf.mxu1 }
 0x228   :  { %v1719_v46 = vpop.f32.mrf.mxu0  ;;  %v1782_v1 = vadd.f32 %v1781_v59, %v1780_v30 }
 0x229   :  { %v1373_v62 = vadd.f32 %v1718_v8, %v2711_v60  ;;  %v1783_v50 = vpop.f32.mrf.mxu1 }
 0x22a   :  { %v1720_v20 = vpop.f32.mrf.mxu0 }
 0x22b   :  { %v1470_v6 = vadd.f32 %v1782_v1, %v1373_v62  ;;  %v1721_v47 = vadd.f32 %v1720_v20, %v1719_v46  ;;  %v1784_v23 = vpop.f32.mrf.mxu1 }
 0x22c   :  { %v1722_v52 = vpop.f32.mrf.mxu0  ;;  %v1785_v14 = vadd.f32 %v1784_v23, %v1783_v50 }
 0x22d   :  { %1520 = vst [vmem:[#allocation10 + $0x20] sm:$0xff] %v1470_v6  ;;  %v1376_v11 = vadd.f32 %v1721_v47, %v2711_v60  ;;  %v1786_v33 = vpop.f32.mrf.mxu1 }
 0x22e   :  { %v1723_v63 = vpop.f32.mrf.mxu0 }
 0x22f   :  { %v1473_v22 = vadd.f32 %v1785_v14, %v1376_v11  ;;  %v1724_v57 = vadd.f32 %v1723_v63, %v1722_v52  ;;  %v1787_v7 = vpop.f32.mrf.mxu1 }
 0x230   :  { %v1725_v58 = vpop.f32.mrf.mxu0  ;;  %v1788_v21 = vadd.f32 %v1787_v7, %v1786_v33 }
 0x231   :  { %1521 = vst [vmem:[#allocation10 + $0x28] sm:$0xff] %v1473_v22  ;;  %v1381_v24 = vadd.f32 %v1724_v57, %v2711_v60  ;;  %v1789_v2 = vpop.f32.mrf.mxu1 }
 0x232   :  { %v1726_v51 = vpop.f32.mrf.mxu0 }
 0x233   :  { %v1478_v53 = vadd.f32 %v1788_v21, %v1381_v24  ;;  %v1727_v54 = vadd.f32 %v1726_v51, %v1725_v58  ;;  %v1790_v9 = vpop.f32.mrf.mxu1 }
 0x234   :  { %v1791_v48 = vadd.f32 %v1790_v9, %v1789_v2 }
 0x235   :  { %1522 = vst [vmem:[#allocation10 + $0x30] sm:$0xff] %v1478_v53  ;;  %v1384_v27 = vadd.f32 %v1727_v54, %v2711_v60 }
 0x237   :  { %v1481_v37 = vadd.f32 %v1791_v48, %v1384_v27 }
 0x239   :  { %1523 = vst [vmem:[#allocation10 + $0x38] sm:$0xff] %v1481_v37 }
 0x244   :  { %v1728_v38 = vpop.f32.mrf.mxu0 }
 0x245   :  { %v1792_v34 = vpop.f32.mrf.mxu1 }
 0x246   :  { %v1729_v49 = vpop.f32.mrf.mxu0 }
 0x247   :  { %v1730_v28 = vadd.f32 %v1729_v49, %v1728_v38  ;;  %v1793_v41 = vpop.f32.mrf.mxu1 }
 0x248   :  { %v1731_v32 = vpop.f32.mrf.mxu0  ;;  %v1794_v40 = vadd.f32 %v1793_v41, %v1792_v34 }
 0x249   :  { %v1389_v39 = vadd.f32 %v1730_v28, %v2711_v60  ;;  %v1795_v10 = vpop.f32.mrf.mxu1 }
 0x24a   :  { %v1732_v16 = vpop.f32.mrf.mxu0 }
 0x24b   :  { %v1486_v17 = vadd.f32 %v1794_v40, %v1389_v39  ;;  %v1733_v44 = vadd.f32 %v1732_v16, %v1731_v32  ;;  %v1796_v36 = vpop.f32.mrf.mxu1 }
 0x24c   :  { %v1734_v45 = vpop.f32.mrf.mxu0  ;;  %v1797_v3 = vadd.f32 %v1796_v36, %v1795_v10 }
 0x24d   :  { %1524 = vst [vmem:[#allocation10 + $0x40] sm:$0xff] %v1486_v17  ;;  %v1392_v42 = vadd.f32 %v1733_v44, %v2711_v60  ;;  %v1798_v55 = vpop.f32.mrf.mxu1 }
 0x24e   :  { %v1735_v26 = vpop.f32.mrf.mxu0 }
 0x24f   :  { %v1489_v35 = vadd.f32 %v1797_v3, %v1392_v42  ;;  %v1736_v29 = vadd.f32 %v1735_v26, %v1734_v45  ;;  %v1799_v43 = vpop.f32.mrf.mxu1 }
 0x250   :  { %v1737_v18 = vpop.f32.mrf.mxu0  ;;  %v1800_v19 = vadd.f32 %v1799_v43, %v1798_v55 }
 0x251   :  { %1525 = vst [vmem:[#allocation10 + $0x48] sm:$0xff] %v1489_v35  ;;  %v1397_v5 = vadd.f32 %v1736_v29, %v2711_v60  ;;  %v1801_v61 = vpop.f32.mrf.mxu1 }
 0x252   :  { %v1738_v15 = vpop.f32.mrf.mxu0 }
 0x253   :  { %v1494_v4 = vadd.f32 %v1800_v19, %v1397_v5  ;;  %v1739_v25 = vadd.f32 %v1738_v15, %v1737_v18  ;;  %v1802_v12 = vpop.f32.mrf.mxu1 }
 0x254   :  { %v1803_v0 = vadd.f32 %v1802_v12, %v1801_v61 }
 0x255   :  { %1526 = vst [vmem:[#allocation10 + $0x50] sm:$0xff] %v1494_v4  ;;  %v1400_v56 = vadd.f32 %v1739_v25, %v2711_v60 }
 0x257   :  { %v1497_v13 = vadd.f32 %v1803_v0, %v1400_v56 }
 0x259   :  { %1527 = vst [vmem:[#allocation10 + $0x58] sm:$0xff] %v1497_v13 }
 0x264   :  { %v1740_v30 = vpop.f32.mrf.mxu0 }
 0x265   :  { %v1804_v31 = vpop.f32.mrf.mxu1 }
 0x266   :  { %v1741_v8 = vpop.f32.mrf.mxu0 }
 0x267   :  { %v1742_v59 = vadd.f32 %v1741_v8, %v1740_v30  ;;  %v1805_v46 = vpop.f32.mrf.mxu1 }
 0x268   :  { %v1743_v62 = vpop.f32.mrf.mxu0  ;;  %v1806_v50 = vadd.f32 %v1805_v46, %v1804_v31 }
 0x269   :  { %v1405_v1 = vadd.f32 %v1742_v59, %v2711_v60  ;;  %v1807_v20 = vpop.f32.mrf.mxu1 }
 0x26a   :  { %v1744_v6 = vpop.f32.mrf.mxu0 }
 0x26b   :  { %v1502_v47 = vadd.f32 %v1806_v50, %v1405_v1  ;;  %v1745_v23 = vadd.f32 %v1744_v6, %v1743_v62  ;;  %v1808_v52 = vpop.f32.mrf.mxu1 }
 0x26c   :  { %v1746_v11 = vpop.f32.mrf.mxu0  ;;  %v1809_v33 = vadd.f32 %v1808_v52, %v1807_v20 }
 0x26d   :  { %1528 = vst [vmem:[#allocation10 + $0x60] sm:$0xff] %v1502_v47  ;;  %v1408_v14 = vadd.f32 %v1745_v23, %v2711_v60  ;;  %v1810_v63 = vpop.f32.mrf.mxu1 }
 0x26e   :  { %v1747_v22 = vpop.f32.mrf.mxu0 }
 0x26f   :  { %v1505_v57 = vadd.f32 %v1809_v33, %v1408_v14  ;;  %v1748_v7 = vadd.f32 %v1747_v22, %v1746_v11  ;;  %v1811_v58 = vpop.f32.mrf.mxu1 }
 0x270   :  { %v1749_v24 = vpop.f32.mrf.mxu0  ;;  %v1812_v2 = vadd.f32 %v1811_v58, %v1810_v63 }
 0x271   :  { %1529 = vst [vmem:[#allocation10 + $0x68] sm:$0xff] %v1505_v57  ;;  %v1413_v21 = vadd.f32 %v1748_v7, %v2711_v60  ;;  %v1813_v51 = vpop.f32.mrf.mxu1 }
 0x272   :  { %v1750_v53 = vpop.f32.mrf.mxu0 }
 0x273   :  { %v1510_v54 = vadd.f32 %v1812_v2, %v1413_v21  ;;  %v1751_v9 = vadd.f32 %v1750_v53, %v1749_v24  ;;  %v1814_v27 = vpop.f32.mrf.mxu1 }
 0x274   :  { %v1815_v37 = vadd.f32 %v1814_v27, %v1813_v51 }
 0x275   :  { %1530 = vst [vmem:[#allocation10 + $0x70] sm:$0xff] %v1510_v54  ;;  %v1416_v48 = vadd.f32 %v1751_v9, %v2711_v60 }
 0x277   :  { %v1513_v38 = vadd.f32 %v1815_v37, %v1416_v48 }
 0x279   :  { %1531 = vst [vmem:[#allocation10 + $0x78] sm:$0xff] %v1513_v38 }
 0x27a   :  { %2263 = shalt.err (!%p2260_p10)
}
 0x27b   :  { %s2290_s17 = smov 128   ;;  %s2291_s18 = smov 8  }
 0x27c   :  { %1543 = dma.vmem_to_hbm [thread:$0]  %s1538_s15, 2048, %s2737_s5, [#allocation4], %s2290_s17, %s2290_s17, %s2291_s18  }
 0x27d   :  { %2278 = dma.done.wait [#allocation4], 2048  }
 0x27e   :  { %2279 = vsyncadd [#allocation4], 4294965248 }
 0x27f   :  { %1547 = vsyncpa [#allocation3], 1 }
 0x280   :  { %1548 = vsyncpa [#allocation6], 1 }
 0x281   :  { %1549 = vsyncpa [#allocation9], 1 }
 0x282   :  { %1550 = vsyncpa [#allocation4], 1 }

</bundles_post_ra>
